<compile_context>
chip_gen: v7x
topology: tpu7x:2x2x1
jax: 0.10.0
libtpu: 0.0.40
codegen_flags: <defaults>
</compile_context>

<pallas_src>
import functools

import jax
import jax.numpy as jnp
from jax.experimental import pallas as pl
from jax.experimental.pallas import tpu as pltpu

_LANE = 128


# ----------------------------- Pallas kernels ------------------------------

def _conv3x3_s2_kernel(w_ref, b_ref, even_ref, odd_ref, o_ref, *, Wo, Mo, relu):
    """3x3 stride-2 conv for one batch item, channels-major, lanes = Ho*Wo.

    The im2col never exists in HBM: tap (i, j) is a (Cout, C) @ (C, Mo) MXU
    matmul whose RHS is a static slice of the phase-split planes already in
    VMEM (i == 1 -> odd-row plane j; else even-row plane j shifted by
    (i//2)*Wo in the flattened (ho, wo) index).  f32 accumulation, fused bias
    (+ ReLU), bf16 lane-dense store.
    """
    acc = None
    for i in range(3):
        for j in range(3):
            if i == 1:
                rhs = odd_ref[j, 0, :, :]                      # (C, Mo)
            else:
                off = (i // 2) * Wo
                rhs = even_ref[j, 0, :, off:off + Mo]          # (C, Mo)
            p = jnp.dot(w_ref[i, j, :, :], rhs,
                        preferred_element_type=jnp.float32)
            acc = p if acc is None else acc + p
    acc = acc + b_ref[...]                                     # (Cout, 1) lane-broadcast
    if relu:
        acc = jnp.maximum(acc, 0.0)
    o_ref[0] = acc.astype(o_ref.dtype)


def _head_kernel(w_ref, b_ref, x_ref, o_ref, *, Wo, stride, tm):
    """Fused (neck∘head) 1x1 conv + delta2bbox + sigmoid for one (batch,
    M-tile) block of one pyramid level.  Anchors are generated in-kernel from
    the lane index (no (4, M) anchor DMA).  Output rows 0:4 = decoded boxes,
    row 4 = sigmoid(cls)."""
    t = pl.program_id(1)
    h = jnp.dot(w_ref[...], x_ref[0], preferred_element_type=jnp.float32)
    h = h + b_ref[...]                                         # (5, tm) f32

    # anchor centers from the flattened spatial index m = ho*Wo + wo
    lane = jax.lax.broadcasted_iota(jnp.int32, (1, tm), 1)
    m = (lane + t * tm).astype(jnp.float32)
    wo_f = jnp.float32(Wo)
    hy = jnp.floor(m / wo_f)                                   # exact for m < 2^24
    wx = m - wo_f * hy
    base = 4.0 * stride                                        # anchor w == h == 4*stride

    # delta2bbox (reference form): gxy = pxy + pwh*dxy, gwh = pwh*exp(dwh)
    o_ref[0, 0:1, :] = wx * stride + base * h[0:1, :]
    o_ref[0, 1:2, :] = hy * stride + base * h[1:2, :]
    o_ref[0, 2:4, :] = base * jnp.exp(h[2:4, :])

    # numerically-stable exact sigmoid (no inf intermediate, no approx recip)
    logit = h[4:5, :]
    e = jnp.exp(-jnp.abs(logit))
    r = 1.0 / (1.0 + e)
    o_ref[0, 4:5, :] = jnp.where(logit >= 0.0, r, e * r)


# --------------------------- tiling / layout helpers -------------------------

def _pick_m_tile(M, tm_max=4096):
    """Return (tm, M_pad): lane-tile size and (possibly lane-padded) M.
    Tiny M -> one full block; medium M -> 2 aligned tiles (both v7x TCs get
    work); large M -> ~tm_max tiles (per-step overhead amortized), padding M
    up to a lane/tile multiple instead of falling back to one giant block."""
    tm_max = max(_LANE, (tm_max // _LANE) * _LANE)
    if M <= _LANE:
        return M, M
    M_pad = -(-M // _LANE) * _LANE
    if M_pad <= 2 * tm_max:
        half = M_pad // 2
        if half % _LANE == 0:
            return half, M_pad                     # exactly 2 tiles, no extra pad
        return M_pad, M_pad                        # single aligned block
    tm = tm_max
    while tm > tm_max // 2 and M_pad % tm != 0:
        tm -= _LANE
    if M_pad % tm == 0:
        return tm, M_pad
    return tm_max, -(-M_pad // tm_max) * tm_max


def _phase_planes(xp, Ho, Wo):
    """Stride-2 tap planes for a 3x3 s2 pad-1 conv.  xp: (B, C, Hp, Wp) bf16.
      even[j][b, c, he, wo] = xp[b, c, 2*he,   2*wo+j],  he in [0, Ho]
      odd [j][b, c, ho, wo] = xp[b, c, 2*ho+1, 2*wo+j],  ho in [0, Ho)
    Flattened over (h, w) so every conv tap is a contiguous slice in-kernel.
    This single ~1.5x gather replaces the previous ~9x wrapper-side im2col."""
    B, C = xp.shape[0], xp.shape[1]
    evens = [xp[:, :, 0:2 * Ho + 1:2, j:j + 2 * Wo:2] for j in range(3)]
    odds = [xp[:, :, 1:2 * Ho:2, j:j + 2 * Wo:2] for j in range(3)]
    even = jnp.stack(evens, axis=0).reshape(3, B, C, (Ho + 1) * Wo)
    odd = jnp.stack(odds, axis=0).reshape(3, B, C, Ho * Wo)
    return even, odd


# --------------------------- Pallas call wrappers ---------------------------

def conv3x3_s2(x, weight, bias, relu=True):
    """3x3 stride-2 pad-1 conv.  x: (B, C, H, W) bf16 (channels-major
    activations).  Returns ((B, Cout, Ho*Wo) bf16, (Ho, Wo))."""
    B, C, H, W = x.shape
    Cout = weight.shape[0]
    Ho = (H - 1) // 2 + 1
    Wo = (W - 1) // 2 + 1
    Mo = Ho * Wo
    xp = jnp.pad(x, ((0, 0), (0, 0), (1, 1), (1, 1)))
    even, odd = _phase_planes(xp, Ho, Wo)
    w_taps = weight.transpose(2, 3, 0, 1).astype(jnp.bfloat16)   # (3, 3, Cout, C)
    kernel = functools.partial(_conv3x3_s2_kernel, Wo=Wo, Mo=Mo, relu=relu)
    out = pl.pallas_call(
        kernel,
        out_shape=jax.ShapeDtypeStruct((B, Cout, Mo), jnp.bfloat16),
        grid=(B,),
        in_specs=[
            pl.BlockSpec((3, 3, Cout, C), lambda b: (0, 0, 0, 0)),
            pl.BlockSpec((Cout, 1), lambda b: (0, 0)),
            pl.BlockSpec((3, 1, C, (Ho + 1) * Wo), lambda b: (0, b, 0, 0)),
            pl.BlockSpec((3, 1, C, Mo), lambda b: (0, b, 0, 0)),
        ],
        out_specs=pl.BlockSpec((1, Cout, Mo), lambda b: (b, 0, 0)),
        compiler_params=pltpu.CompilerParams(dimension_semantics=("parallel",)),
    )(w_taps, bias.astype(jnp.float32).reshape(Cout, 1), even, odd)
    return out, (Ho, Wo)


def pallas_head_level(x, w_fold, b_fold, Wo, stride, tm_max=4096):
    """Fused folded-neck+head 1x1 conv + in-kernel anchors + delta2bbox +
    sigmoid for one pyramid level.  x: (B, C, Mo) bf16 backbone features,
    w_fold: (5, C), b_fold: (5,).  Output (B, 5, Mo) f32."""
    B, C, Mo = x.shape
    tm, Mo_pad = _pick_m_tile(Mo, tm_max)
    if Mo_pad != Mo:
        x = jnp.pad(x, ((0, 0), (0, 0), (0, Mo_pad - Mo)))
    kernel = functools.partial(_head_kernel, Wo=Wo, stride=float(stride), tm=tm)
    det = pl.pallas_call(
        kernel,
        out_shape=jax.ShapeDtypeStruct((B, 5, Mo_pad), jnp.float32),
        grid=(B, Mo_pad // tm),
        in_specs=[
            pl.BlockSpec((5, C), lambda b, t: (0, 0)),
            pl.BlockSpec((5, 1), lambda b, t: (0, 0)),
            pl.BlockSpec((1, C, tm), lambda b, t: (b, 0, t)),
        ],
        out_specs=pl.BlockSpec((1, 5, tm), lambda b, t: (b, 0, t)),
        compiler_params=pltpu.CompilerParams(
            dimension_semantics=("parallel", "parallel")),
    )(w_fold.astype(jnp.bfloat16), b_fold.astype(jnp.float32).reshape(5, 1), x)
    if Mo_pad != Mo:
        det = det[:, :, :Mo]
    return det


# ------------------------------ model glue -----------------------------------

def init_params(key):
    ks = jax.random.split(key, 12)
    w = lambda k, shape: 0.1 * jax.random.normal(k, shape, jnp.float32)
    return {
        "bb1_w": w(ks[0], (16, 3, 3, 3)),  "bb1_b": w(ks[1], (16,)),
        "bb2_w": w(ks[2], (32, 16, 3, 3)), "bb2_b": w(ks[3], (32,)),
        "neck1_w": w(ks[4], (32, 16, 1, 1)), "neck1_b": w(ks[5], (32,)),
        "neck2_w": w(ks[6], (32, 32, 1, 1)), "neck2_b": w(ks[7], (32,)),
        "cls_w": w(ks[8], (1, 32, 1, 1)),  "cls_b": w(ks[9], (1,)),
        "reg_w": w(ks[10], (4, 32, 1, 1)), "reg_b": w(ks[11], (4,)),
    }


def exported_mdl_forward(params, img):
    """ExportedMdl.forward.  img: NCHW float32 -> (B, 1, num_anchors_total, 5)."""
    B = img.shape[0]
    # nn.ZeroPad2d((0, 0, 4, 4)): pad height by 4 top/bottom — in bf16 so the
    # padded-image HBM materialization is half the bytes.
    x = jnp.pad(img.astype(jnp.bfloat16), ((0, 0), (0, 0), (4, 4), (0, 0)))

    # backbone: two 3x3 s2 convs with in-kernel taps; activations stay
    # channels-major flattened bf16, no NCHW<->NHWC relayouts between convs.
    f1, (H1, W1) = conv3x3_s2(x, params["bb1_w"], params["bb1_b"], relu=True)
    f2, (H2, W2) = conv3x3_s2(f1.reshape(B, f1.shape[1], H1, W1),
                              params["bb2_w"], params["bb2_b"], relu=True)

    # Linear neck folded algebraically into the shared head:
    #   W' = W_head @ W_neck,  b' = W_head @ b_neck + b_head
    # (deletes the (32, M) neck intermediates, their pallas_calls and x_cat).
    w_head = jnp.concatenate([params["reg_w"].reshape(4, -1),
                              params["cls_w"].reshape(1, -1)], axis=0)   # (5, 32)
    b_head = jnp.concatenate([params["reg_b"], params["cls_b"]])         # (5,)
    w1 = w_head @ params["neck1_w"].reshape(32, 16)                      # (5, 16)
    b1 = w_head @ params["neck1_b"] + b_head
    w2 = w_head @ params["neck2_w"].reshape(32, 32)                      # (5, 32)
    b2 = w_head @ params["neck2_b"] + b_head

    # fused head per level: folded 1x1 conv + anchors + delta2bbox + sigmoid
    det1 = pallas_head_level(f1, w1, b1, W1, stride=2)   # (B, 5, H1*W1) f32
    det2 = pallas_head_level(f2, w2, b2, W2, stride=4)   # (B, 5, H2*W2) f32

    # Reference (contractual) output layout (B, 1, N_total, 5); the 5-wide
    # minor-dim transpose is mandated by torch.cat([bbox, cls], -1).unsqueeze(1).
    det = jnp.concatenate([det1, det2], axis=2)          # (B, 5, N1+N2)
    return det.transpose(0, 2, 1)[:, None, :, :]


if __name__ == "__main__":
    key = jax.random.PRNGKey(0)
    pkey, xkey = jax.random.split(key)
    params = init_params(pkey)
    img = jax.random.normal(xkey, (2, 3, 24, 16), jnp.float32)   # small NCHW input

    fwd = jax.jit(functools.partial(exported_mdl_forward, params))
    out = jax.block_until_ready(fwd(img))

    n_total = 16 * 8 + 8 * 4   # level-1 (16x8) + level-2 (8x4) anchors
    assert out.shape == (2, 1, n_total, 5), out.shape
    assert bool(jnp.all(jnp.isfinite(out)))
    print("KERNEL_OK")
</pallas_src>

<mosaic_0001>
module attributes {stable_mosaic.version = 11 : i64} {
  func.func @_conv3x3_s2_kernel(%arg0: i32, %arg1: memref<3x3x16x3xbf16, #tpu.memory_space<vmem>>, %arg2: memref<16x1xf32, #tpu.memory_space<vmem>>, %arg3: memref<3x1x3x136xbf16, #tpu.memory_space<vmem>>, %arg4: memref<3x1x3x128xbf16, #tpu.memory_space<vmem>>, %arg5: memref<1x16x128xbf16, #tpu.memory_space<vmem>>) attributes {dimension_semantics = [#tpu.dimension_semantics<parallel>], iteration_bounds = array<i64: 2>, scalar_prefetch = 0 : i64, scratch_operands = 0 : i64, tpu.core_type = #tpu.core_type<tc>, window_params = [{pipeline_mode = #tpu.pipeline_mode<synchronous>, transform_indices = @transform_0, window_bounds = array<i64: 3, 3, 16, 3>}, {pipeline_mode = #tpu.pipeline_mode<synchronous>, transform_indices = @transform_1, window_bounds = array<i64: 16, 1>}, {transform_indices = @transform_2, window_bounds = array<i64: 3, 1, 3, 136>}, {transform_indices = @transform_3, window_bounds = array<i64: 3, 1, 3, 128>}, {transform_indices = @transform_4, window_bounds = array<i64: 1, 16, 128>}]} {
    %c0 = arith.constant 0 : index
    %c0_0 = arith.constant 0 : index
    %c0_1 = arith.constant 0 : index
    %c0_2 = arith.constant 0 : index
    %0 = vector.load %arg3[%c0, %c0_0, %c0_1, %c0_2] : memref<3x1x3x136xbf16, #tpu.memory_space<vmem>>, vector<1x1x3x128xbf16>
    %1 = vector.shape_cast %0 : vector<1x1x3x128xbf16> to vector<3x128xbf16>
    %c0_3 = arith.constant 0 : index
    %c0_4 = arith.constant 0 : index
    %c0_5 = arith.constant 0 : index
    %c0_6 = arith.constant 0 : index
    %2 = vector.load %arg1[%c0_3, %c0_4, %c0_5, %c0_6] : memref<3x3x16x3xbf16, #tpu.memory_space<vmem>>, vector<1x1x16x3xbf16>
    %3 = vector.shape_cast %2 : vector<1x1x16x3xbf16> to vector<16x3xbf16>
    %cst = arith.constant dense<0.000000e+00> : vector<16x128xf32>
    %4 = tpu.matmul %3, %1, %cst {dimension_numbers = #tpu.dot_dimension_numbers<[1], [0], [0], [1], [0, 0, 1, 1], [], []>} : vector<16x3xbf16>, vector<3x128xbf16>, vector<16x128xf32> -> vector<16x128xf32>
    %c1 = arith.constant 1 : index
    %c0_7 = arith.constant 0 : index
    %c0_8 = arith.constant 0 : index
    %c0_9 = arith.constant 0 : index
    %5 = vector.load %arg3[%c1, %c0_7, %c0_8, %c0_9] : memref<3x1x3x136xbf16, #tpu.memory_space<vmem>>, vector<1x1x3x128xbf16>
    %6 = vector.shape_cast %5 : vector<1x1x3x128xbf16> to vector<3x128xbf16>
    %c0_10 = arith.constant 0 : index
    %c1_11 = arith.constant 1 : index
    %c0_12 = arith.constant 0 : index
    %c0_13 = arith.constant 0 : index
    %7 = vector.load %arg1[%c0_10, %c1_11, %c0_12, %c0_13] : memref<3x3x16x3xbf16, #tpu.memory_space<vmem>>, vector<1x1x16x3xbf16>
    %8 = vector.shape_cast %7 : vector<1x1x16x3xbf16> to vector<16x3xbf16>
    %cst_14 = arith.constant dense<0.000000e+00> : vector<16x128xf32>
    %9 = tpu.matmul %8, %6, %cst_14 {dimension_numbers = #tpu.dot_dimension_numbers<[1], [0], [0], [1], [0, 0, 1, 1], [], []>} : vector<16x3xbf16>, vector<3x128xbf16>, vector<16x128xf32> -> vector<16x128xf32>
    %10 = arith.addf %4, %9 : vector<16x128xf32>
    %c2 = arith.constant 2 : index
    %c0_15 = arith.constant 0 : index
    %c0_16 = arith.constant 0 : index
    %c0_17 = arith.constant 0 : index
    %11 = vector.load %arg3[%c2, %c0_15, %c0_16, %c0_17] : memref<3x1x3x136xbf16, #tpu.memory_space<vmem>>, vector<1x1x3x128xbf16>
    %12 = vector.shape_cast %11 : vector<1x1x3x128xbf16> to vector<3x128xbf16>
    %c0_18 = arith.constant 0 : index
    %c2_19 = arith.constant 2 : index
    %c0_20 = arith.constant 0 : index
    %c0_21 = arith.constant 0 : index
    %13 = vector.load %arg1[%c0_18, %c2_19, %c0_20, %c0_21] : memref<3x3x16x3xbf16, #tpu.memory_space<vmem>>, vector<1x1x16x3xbf16>
    %14 = vector.shape_cast %13 : vector<1x1x16x3xbf16> to vector<16x3xbf16>
    %cst_22 = arith.constant dense<0.000000e+00> : vector<16x128xf32>
    %15 = tpu.matmul %14, %12, %cst_22 {dimension_numbers = #tpu.dot_dimension_numbers<[1], [0], [0], [1], [0, 0, 1, 1], [], []>} : vector<16x3xbf16>, vector<3x128xbf16>, vector<16x128xf32> -> vector<16x128xf32>
    %16 = arith.addf %10, %15 : vector<16x128xf32>
    %c0_23 = arith.constant 0 : index
    %c0_24 = arith.constant 0 : index
    %c0_25 = arith.constant 0 : index
    %c0_26 = arith.constant 0 : index
    %17 = vector.load %arg4[%c0_23, %c0_24, %c0_25, %c0_26] : memref<3x1x3x128xbf16, #tpu.memory_space<vmem>>, vector<1x1x3x128xbf16>
    %18 = vector.shape_cast %17 : vector<1x1x3x128xbf16> to vector<3x128xbf16>
    %c1_27 = arith.constant 1 : index
    %c0_28 = arith.constant 0 : index
    %c0_29 = arith.constant 0 : index
    %c0_30 = arith.constant 0 : index
    %19 = vector.load %arg1[%c1_27, %c0_28, %c0_29, %c0_30] : memref<3x3x16x3xbf16, #tpu.memory_space<vmem>>, vector<1x1x16x3xbf16>
    %20 = vector.shape_cast %19 : vector<1x1x16x3xbf16> to vector<16x3xbf16>
    %cst_31 = arith.constant dense<0.000000e+00> : vector<16x128xf32>
    %21 = tpu.matmul %20, %18, %cst_31 {dimension_numbers = #tpu.dot_dimension_numbers<[1], [0], [0], [1], [0, 0, 1, 1], [], []>} : vector<16x3xbf16>, vector<3x128xbf16>, vector<16x128xf32> -> vector<16x128xf32>
    %22 = arith.addf %16, %21 : vector<16x128xf32>
    %c1_32 = arith.constant 1 : index
    %c0_33 = arith.constant 0 : index
    %c0_34 = arith.constant 0 : index
    %c0_35 = arith.constant 0 : index
    %23 = vector.load %arg4[%c1_32, %c0_33, %c0_34, %c0_35] : memref<3x1x3x128xbf16, #tpu.memory_space<vmem>>, vector<1x1x3x128xbf16>
    %24 = vector.shape_cast %23 : vector<1x1x3x128xbf16> to vector<3x128xbf16>
    %c1_36 = arith.constant 1 : index
    %c1_37 = arith.constant 1 : index
    %c0_38 = arith.constant 0 : index
    %c0_39 = arith.constant 0 : index
    %25 = vector.load %arg1[%c1_36, %c1_37, %c0_38, %c0_39] : memref<3x3x16x3xbf16, #tpu.memory_space<vmem>>, vector<1x1x16x3xbf16>
    %26 = vector.shape_cast %25 : vector<1x1x16x3xbf16> to vector<16x3xbf16>
    %cst_40 = arith.constant dense<0.000000e+00> : vector<16x128xf32>
    %27 = tpu.matmul %26, %24, %cst_40 {dimension_numbers = #tpu.dot_dimension_numbers<[1], [0], [0], [1], [0, 0, 1, 1], [], []>} : vector<16x3xbf16>, vector<3x128xbf16>, vector<16x128xf32> -> vector<16x128xf32>
    %28 = arith.addf %22, %27 : vector<16x128xf32>
    %c2_41 = arith.constant 2 : index
    %c0_42 = arith.constant 0 : index
    %c0_43 = arith.constant 0 : index
    %c0_44 = arith.constant 0 : index
    %29 = vector.load %arg4[%c2_41, %c0_42, %c0_43, %c0_44] : memref<3x1x3x128xbf16, #tpu.memory_space<vmem>>, vector<1x1x3x128xbf16>
    %30 = vector.shape_cast %29 : vector<1x1x3x128xbf16> to vector<3x128xbf16>
    %c1_45 = arith.constant 1 : index
    %c2_46 = arith.constant 2 : index
    %c0_47 = arith.constant 0 : index
    %c0_48 = arith.constant 0 : index
    %31 = vector.load %arg1[%c1_45, %c2_46, %c0_47, %c0_48] : memref<3x3x16x3xbf16, #tpu.memory_space<vmem>>, vector<1x1x16x3xbf16>
    %32 = vector.shape_cast %31 : vector<1x1x16x3xbf16> to vector<16x3xbf16>
    %cst_49 = arith.constant dense<0.000000e+00> : vector<16x128xf32>
    %33 = tpu.matmul %32, %30, %cst_49 {dimension_numbers = #tpu.dot_dimension_numbers<[1], [0], [0], [1], [0, 0, 1, 1], [], []>} : vector<16x3xbf16>, vector<3x128xbf16>, vector<16x128xf32> -> vector<16x128xf32>
    %34 = arith.addf %28, %33 : vector<16x128xf32>
    %c0_50 = arith.constant 0 : index
    %c0_51 = arith.constant 0 : index
    %c0_52 = arith.constant 0 : index
    %c8 = arith.constant 8 : index
    %35 = vector.load %arg3[%c0_50, %c0_51, %c0_52, %c8] : memref<3x1x3x136xbf16, #tpu.memory_space<vmem>>, vector<1x1x3x128xbf16>
    %36 = vector.shape_cast %35 : vector<1x1x3x128xbf16> to vector<3x128xbf16>
    %c2_53 = arith.constant 2 : index
    %c0_54 = arith.constant 0 : index
    %c0_55 = arith.constant 0 : index
    %c0_56 = arith.constant 0 : index
    %37 = vector.load %arg1[%c2_53, %c0_54, %c0_55, %c0_56] : memref<3x3x16x3xbf16, #tpu.memory_space<vmem>>, vector<1x1x16x3xbf16>
    %38 = vector.shape_cast %37 : vector<1x1x16x3xbf16> to vector<16x3xbf16>
    %cst_57 = arith.constant dense<0.000000e+00> : vector<16x128xf32>
    %39 = tpu.matmul %38, %36, %cst_57 {dimension_numbers = #tpu.dot_dimension_numbers<[1], [0], [0], [1], [0, 0, 1, 1], [], []>} : vector<16x3xbf16>, vector<3x128xbf16>, vector<16x128xf32> -> vector<16x128xf32>
    %40 = arith.addf %34, %39 : vector<16x128xf32>
    %c1_58 = arith.constant 1 : index
    %c0_59 = arith.constant 0 : index
    %c0_60 = arith.constant 0 : index
    %c8_61 = arith.constant 8 : index
    %41 = vector.load %arg3[%c1_58, %c0_59, %c0_60, %c8_61] : memref<3x1x3x136xbf16, #tpu.memory_space<vmem>>, vector<1x1x3x128xbf16>
    %42 = vector.shape_cast %41 : vector<1x1x3x128xbf16> to vector<3x128xbf16>
    %c2_62 = arith.constant 2 : index
    %c1_63 = arith.constant 1 : index
    %c0_64 = arith.constant 0 : index
    %c0_65 = arith.constant 0 : index
    %43 = vector.load %arg1[%c2_62, %c1_63, %c0_64, %c0_65] : memref<3x3x16x3xbf16, #tpu.memory_space<vmem>>, vector<1x1x16x3xbf16>
    %44 = vector.shape_cast %43 : vector<1x1x16x3xbf16> to vector<16x3xbf16>
    %cst_66 = arith.constant dense<0.000000e+00> : vector<16x128xf32>
    %45 = tpu.matmul %44, %42, %cst_66 {dimension_numbers = #tpu.dot_dimension_numbers<[1], [0], [0], [1], [0, 0, 1, 1], [], []>} : vector<16x3xbf16>, vector<3x128xbf16>, vector<16x128xf32> -> vector<16x128xf32>
    %46 = arith.addf %40, %45 : vector<16x128xf32>
    %c2_67 = arith.constant 2 : index
    %c0_68 = arith.constant 0 : index
    %c0_69 = arith.constant 0 : index
    %c8_70 = arith.constant 8 : index
    %47 = vector.load %arg3[%c2_67, %c0_68, %c0_69, %c8_70] : memref<3x1x3x136xbf16, #tpu.memory_space<vmem>>, vector<1x1x3x128xbf16>
    %48 = vector.shape_cast %47 : vector<1x1x3x128xbf16> to vector<3x128xbf16>
    %c2_71 = arith.constant 2 : index
    %c2_72 = arith.constant 2 : index
    %c0_73 = arith.constant 0 : index
    %c0_74 = arith.constant 0 : index
    %49 = vector.load %arg1[%c2_71, %c2_72, %c0_73, %c0_74] : memref<3x3x16x3xbf16, #tpu.memory_space<vmem>>, vector<1x1x16x3xbf16>
    %50 = vector.shape_cast %49 : vector<1x1x16x3xbf16> to vector<16x3xbf16>
    %cst_75 = arith.constant dense<0.000000e+00> : vector<16x128xf32>
    %51 = tpu.matmul %50, %48, %cst_75 {dimension_numbers = #tpu.dot_dimension_numbers<[1], [0], [0], [1], [0, 0, 1, 1], [], []>} : vector<16x3xbf16>, vector<3x128xbf16>, vector<16x128xf32> -> vector<16x128xf32>
    %52 = arith.addf %46, %51 : vector<16x128xf32>
    %c0_76 = arith.constant 0 : index
    %c0_77 = arith.constant 0 : index
    %53 = vector.load %arg2[%c0_76, %c0_77] : memref<16x1xf32, #tpu.memory_space<vmem>>, vector<16x1xf32>
    %54 = vector.broadcast %53 : vector<16x1xf32> to vector<16x128xf32>
    %55 = arith.addf %52, %54 : vector<16x128xf32>
    %cst_78 = arith.constant 0.000000e+00 : f32
    %56 = vector.broadcast %cst_78 : f32 to vector<16x128xf32>
    %57 = arith.maximumf %55, %56 : vector<16x128xf32>
    %58 = arith.truncf %57 : vector<16x128xf32> to vector<16x128xbf16>
    %c0_79 = arith.constant 0 : index
    %c0_80 = arith.constant 0 : index
    %c0_81 = arith.constant 0 : index
    %59 = vector.load %arg5[%c0_79, %c0_80, %c0_81] : memref<1x16x128xbf16, #tpu.memory_space<vmem>>, vector<1x16x128xbf16>
    %60 = vector.shape_cast %59 : vector<1x16x128xbf16> to vector<16x128xbf16>
    %61 = vector.shape_cast %58 : vector<16x128xbf16> to vector<1x16x128xbf16>
    tpu.vector_store %arg5[%c0_79, %c0_80, %c0_81], %61 {strides = array<i32>} : memref<1x16x128xbf16, #tpu.memory_space<vmem>>, vector<1x16x128xbf16>,
    return
  }
  func.func @transform_0(%arg0: i32) -> (i32, i32, i32, i32) {
    %c0_i32 = arith.constant 0 : i32
    %c0_i32_0 = arith.constant 0 : i32
    %c0_i32_1 = arith.constant 0 : i32
    %c0_i32_2 = arith.constant 0 : i32
    %c0_i32_3 = arith.constant 0 : i32
    return %c0_i32, %c0_i32_0, %c0_i32_1, %c0_i32_2 : i32, i32, i32, i32
  }
  func.func @transform_1(%arg0: i32) -> (i32, i32) {
    %c0_i32 = arith.constant 0 : i32
    %c0_i32_0 = arith.constant 0 : i32
    %c0_i32_1 = arith.constant 0 : i32
    return %c0_i32, %c0_i32_0 : i32, i32
  }
  func.func @transform_2(%arg0: i32) -> (i32, i32, i32, i32) {
    %c0_i32 = arith.constant 0 : i32
    %c0_i32_0 = arith.constant 0 : i32
    %c0_i32_1 = arith.constant 0 : i32
    %c0_i32_2 = arith.constant 0 : i32
    return %c0_i32, %arg0, %c0_i32_0, %c0_i32_1 : i32, i32, i32, i32
  }
  func.func @transform_3(%arg0: i32) -> (i32, i32, i32, i32) {
    %c0_i32 = arith.constant 0 : i32
    %c0_i32_0 = arith.constant 0 : i32
    %c0_i32_1 = arith.constant 0 : i32
    %c0_i32_2 = arith.constant 0 : i32
    return %c0_i32, %arg0, %c0_i32_0, %c0_i32_1 : i32, i32, i32, i32
  }
  func.func @transform_4(%arg0: i32) -> (i32, i32, i32) {
    %c0_i32 = arith.constant 0 : i32
    %c0_i32_0 = arith.constant 0 : i32
    %c0_i32_1 = arith.constant 0 : i32
    return %arg0, %c0_i32, %c0_i32_0 : i32, i32, i32
  }
}

module attributes {stable_mosaic.version = 11 : i64} {
  func.func @_head_kernel(%arg0: i32, %arg1: i32, %arg2: memref<5x32xbf16, #tpu.memory_space<vmem>>, %arg3: memref<5x1xf32, #tpu.memory_space<vmem>>, %arg4: memref<1x32x32xbf16, #tpu.memory_space<vmem>>, %arg5: memref<1x5x32xf32, #tpu.memory_space<vmem>>) attributes {dimension_semantics = [#tpu.dimension_semantics<parallel>, #tpu.dimension_semantics<parallel>], iteration_bounds = array<i64: 2, 1>, scalar_prefetch = 0 : i64, scratch_operands = 0 : i64, tpu.core_type = #tpu.core_type<tc>, window_params = [{pipeline_mode = #tpu.pipeline_mode<synchronous>, transform_indices = @transform_0, window_bounds = array<i64: 5, 32>}, {pipeline_mode = #tpu.pipeline_mode<synchronous>, transform_indices = @transform_1, window_bounds = array<i64: 5, 1>}, {transform_indices = @transform_2, window_bounds = array<i64: 1, 32, 32>}, {transform_indices = @transform_3, window_bounds = array<i64: 1, 5, 32>}]} {
    %c0 = arith.constant 0 : index
    %c0_0 = arith.constant 0 : index
    %0 = vector.load %arg2[%c0, %c0_0] : memref<5x32xbf16, #tpu.memory_space<vmem>>, vector<5x32xbf16>
    %c0_1 = arith.constant 0 : index
    %c0_2 = arith.constant 0 : index
    %c0_3 = arith.constant 0 : index
    %1 = vector.load %arg4[%c0_1, %c0_2, %c0_3] : memref<1x32x32xbf16, #tpu.memory_space<vmem>>, vector<1x32x32xbf16>
    %2 = vector.shape_cast %1 : vector<1x32x32xbf16> to vector<32x32xbf16>
    %cst = arith.constant dense<0.000000e+00> : vector<5x32xf32>
    %3 = tpu.matmul %0, %2, %cst {dimension_numbers = #tpu.dot_dimension_numbers<[1], [0], [0], [1], [0, 0, 1, 1], [], []>} : vector<5x32xbf16>, vector<32x32xbf16>, vector<5x32xf32> -> vector<5x32xf32>
    %c0_4 = arith.constant 0 : index
    %c0_5 = arith.constant 0 : index
    %4 = vector.load %arg3[%c0_4, %c0_5] : memref<5x1xf32, #tpu.memory_space<vmem>>, vector<5x1xf32>
    %5 = vector.broadcast %4 : vector<5x1xf32> to vector<5x32xf32>
    %6 = arith.addf %3, %5 : vector<5x32xf32>
    %7 = tpu.iota {dimensions = array<i32: 1>} : vector<1x32xi32>
    %c32_i32 = arith.constant 32 : i32
    %8 = arith.muli %arg1, %c32_i32 : i32
    %9 = vector.broadcast %8 : i32 to vector<1x32xi32>
    %10 = arith.addi %7, %9 : vector<1x32xi32>
    %11 = arith.sitofp %10 : vector<1x32xi32> to vector<1x32xf32>
    %cst_6 = arith.constant 4.000000e+00 : f32
    %12 = vector.broadcast %cst_6 : f32 to vector<1x32xf32>
    %13 = arith.divf %11, %12 : vector<1x32xf32>
    %14 = math.floor %13 : vector<1x32xf32>
    %cst_7 = arith.constant 4.000000e+00 : f32
    %15 = vector.broadcast %cst_7 : f32 to vector<1x32xf32>
    %16 = arith.mulf %15, %14 : vector<1x32xf32>
    %17 = arith.subf %11, %16 : vector<1x32xf32>
    %cst_8 = arith.constant 4.000000e+00 : f32
    %18 = vector.broadcast %cst_8 : f32 to vector<1x32xf32>
    %19 = arith.mulf %17, %18 : vector<1x32xf32>
    %20 = vector.extract_strided_slice %6 {offsets = [0, 0], sizes = [1, 32], strides = [1, 1]} : vector<5x32xf32> to vector<1x32xf32>
    %cst_9 = arith.constant 1.600000e+01 : f32
    %21 = vector.broadcast %cst_9 : f32 to vector<1x32xf32>
    %22 = arith.mulf %21, %20 : vector<1x32xf32>
    %23 = arith.addf %19, %22 : vector<1x32xf32>
    %c0_10 = arith.constant 0 : index
    %c0_11 = arith.constant 0 : index
    %c0_12 = arith.constant 0 : index
    %24 = vector.load %arg5[%c0_10, %c0_11, %c0_12] : memref<1x5x32xf32, #tpu.memory_space<vmem>>, vector<1x1x32xf32>
    %25 = vector.shape_cast %24 : vector<1x1x32xf32> to vector<1x32xf32>
    %26 = vector.shape_cast %23 : vector<1x32xf32> to vector<1x1x32xf32>
    tpu.vector_store %arg5[%c0_10, %c0_11, %c0_12], %26 {strides = array<i32>} : memref<1x5x32xf32, #tpu.memory_space<vmem>>, vector<1x1x32xf32>,
    %cst_13 = arith.constant 4.000000e+00 : f32
    %27 = vector.broadcast %cst_13 : f32 to vector<1x32xf32>
    %28 = arith.mulf %14, %27 : vector<1x32xf32>
    %29 = vector.extract_strided_slice %6 {offsets = [1, 0], sizes = [1, 32], strides = [1, 1]} : vector<5x32xf32> to vector<1x32xf32>
    %cst_14 = arith.constant 1.600000e+01 : f32
    %30 = vector.broadcast %cst_14 : f32 to vector<1x32xf32>
    %31 = arith.mulf %30, %29 : vector<1x32xf32>
    %32 = arith.addf %28, %31 : vector<1x32xf32>
    %c0_15 = arith.constant 0 : index
    %c1 = arith.constant 1 : index
    %c0_16 = arith.constant 0 : index
    %33 = vector.load %arg5[%c0_15, %c1, %c0_16] : memref<1x5x32xf32, #tpu.memory_space<vmem>>, vector<1x1x32xf32>
    %34 = vector.shape_cast %33 : vector<1x1x32xf32> to vector<1x32xf32>
    %35 = vector.shape_cast %32 : vector<1x32xf32> to vector<1x1x32xf32>
    tpu.vector_store %arg5[%c0_15, %c1, %c0_16], %35 {strides = array<i32>} : memref<1x5x32xf32, #tpu.memory_space<vmem>>, vector<1x1x32xf32>,
    %36 = vector.extract_strided_slice %6 {offsets = [2, 0], sizes = [2, 32], strides = [1, 1]} : vector<5x32xf32> to vector<2x32xf32>
    %37 = math.exp %36 : vector<2x32xf32>
    %cst_17 = arith.constant 1.600000e+01 : f32
    %38 = vector.broadcast %cst_17 : f32 to vector<2x32xf32>
    %39 = arith.mulf %38, %37 : vector<2x32xf32>
    %c0_18 = arith.constant 0 : index
    %c2 = arith.constant 2 : index
    %c0_19 = arith.constant 0 : index
    %40 = vector.load %arg5[%c0_18, %c2, %c0_19] : memref<1x5x32xf32, #tpu.memory_space<vmem>>, vector<1x2x32xf32>
    %41 = vector.shape_cast %40 : vector<1x2x32xf32> to vector<2x32xf32>
    %42 = vector.shape_cast %39 : vector<2x32xf32> to vector<1x2x32xf32>
    tpu.vector_store %arg5[%c0_18, %c2, %c0_19], %42 {strides = array<i32>} : memref<1x5x32xf32, #tpu.memory_space<vmem>>, vector<1x2x32xf32>,
    %43 = vector.extract_strided_slice %6 {offsets = [4, 0], sizes = [1, 32], strides = [1, 1]} : vector<5x32xf32> to vector<1x32xf32>
    %44 = math.absf %43 : vector<1x32xf32>
    %cst_20 = arith.constant 0.000000e+00 : f32
    %45 = vector.broadcast %cst_20 : f32 to vector<1x32xf32>
    %46 = arith.subf %45, %44 : vector<1x32xf32>
    %47 = math.exp %46 : vector<1x32xf32>
    %cst_21 = arith.constant 1.000000e+00 : f32
    %48 = vector.broadcast %cst_21 : f32 to vector<1x32xf32>
    %49 = arith.addf %48, %47 : vector<1x32xf32>
    %cst_22 = arith.constant 1.000000e+00 : f32
    %50 = vector.broadcast %cst_22 : f32 to vector<1x32xf32>
    %51 = arith.divf %50, %49 : vector<1x32xf32>
    %cst_23 = arith.constant 0.000000e+00 : f32
    %52 = vector.broadcast %cst_23 : f32 to vector<1x32xf32>
    %53 = arith.cmpf oge, %43, %52 : vector<1x32xf32>
    %54 = arith.mulf %47, %51 : vector<1x32xf32>
    %55 = arith.select %53, %51, %54 : vector<1x32xi1>, vector<1x32xf32>
    %c0_24 = arith.constant 0 : index
    %c4 = arith.constant 4 : index
    %c0_25 = arith.constant 0 : index
    %56 = vector.load %arg5[%c0_24, %c4, %c0_25] : memref<1x5x32xf32, #tpu.memory_space<vmem>>, vector<1x1x32xf32>
    %57 = vector.shape_cast %56 : vector<1x1x32xf32> to vector<1x32xf32>
    %58 = vector.shape_cast %55 : vector<1x32xf32> to vector<1x1x32xf32>
    tpu.vector_store %arg5[%c0_24, %c4, %c0_25], %58 {strides = array<i32>} : memref<1x5x32xf32, #tpu.memory_space<vmem>>, vector<1x1x32xf32>,
    return
  }
  func.func @transform_0(%arg0: i32, %arg1: i32) -> (i32, i32) {
    %c0_i32 = arith.constant 0 : i32
    %c0_i32_0 = arith.constant 0 : i32
    %c0_i32_1 = arith.constant 0 : i32
    return %c0_i32, %c0_i32_0 : i32, i32
  }
  func.func @transform_1(%arg0: i32, %arg1: i32) -> (i32, i32) {
    %c0_i32 = arith.constant 0 : i32
    %c0_i32_0 = arith.constant 0 : i32
    %c0_i32_1 = arith.constant 0 : i32
    return %c0_i32, %c0_i32_0 : i32, i32
  }
  func.func @transform_2(%arg0: i32, %arg1: i32) -> (i32, i32, i32) {
    %c0_i32 = arith.constant 0 : i32
    %c0_i32_0 = arith.constant 0 : i32
    return %arg0, %c0_i32, %arg1 : i32, i32, i32
  }
  func.func @transform_3(%arg0: i32, %arg1: i32) -> (i32, i32, i32) {
    %c0_i32 = arith.constant 0 : i32
    %c0_i32_0 = arith.constant 0 : i32
    return %arg0, %c0_i32, %arg1 : i32, i32, i32
  }
}

module attributes {stable_mosaic.version = 11 : i64} {
  func.func @_head_kernel(%arg0: i32, %arg1: i32, %arg2: memref<5x16xbf16, #tpu.memory_space<vmem>>, %arg3: memref<5x1xf32, #tpu.memory_space<vmem>>, %arg4: memref<1x16x128xbf16, #tpu.memory_space<vmem>>, %arg5: memref<1x5x128xf32, #tpu.memory_space<vmem>>) attributes {dimension_semantics = [#tpu.dimension_semantics<parallel>, #tpu.dimension_semantics<parallel>], iteration_bounds = array<i64: 2, 1>, scalar_prefetch = 0 : i64, scratch_operands = 0 : i64, tpu.core_type = #tpu.core_type<tc>, window_params = [{pipeline_mode = #tpu.pipeline_mode<synchronous>, transform_indices = @transform_0, window_bounds = array<i64: 5, 16>}, {pipeline_mode = #tpu.pipeline_mode<synchronous>, transform_indices = @transform_1, window_bounds = array<i64: 5, 1>}, {transform_indices = @transform_2, window_bounds = array<i64: 1, 16, 128>}, {transform_indices = @transform_3, window_bounds = array<i64: 1, 5, 128>}]} {
    %c0 = arith.constant 0 : index
    %c0_0 = arith.constant 0 : index
    %0 = vector.load %arg2[%c0, %c0_0] : memref<5x16xbf16, #tpu.memory_space<vmem>>, vector<5x16xbf16>
    %c0_1 = arith.constant 0 : index
    %c0_2 = arith.constant 0 : index
    %c0_3 = arith.constant 0 : index
    %1 = vector.load %arg4[%c0_1, %c0_2, %c0_3] : memref<1x16x128xbf16, #tpu.memory_space<vmem>>, vector<1x16x128xbf16>
    %2 = vector.shape_cast %1 : vector<1x16x128xbf16> to vector<16x128xbf16>
    %cst = arith.constant dense<0.000000e+00> : vector<5x128xf32>
    %3 = tpu.matmul %0, %2, %cst {dimension_numbers = #tpu.dot_dimension_numbers<[1], [0], [0], [1], [0, 0, 1, 1], [], []>} : vector<5x16xbf16>, vector<16x128xbf16>, vector<5x128xf32> -> vector<5x128xf32>
    %c0_4 = arith.constant 0 : index
    %c0_5 = arith.constant 0 : index
    %4 = vector.load %arg3[%c0_4, %c0_5] : memref<5x1xf32, #tpu.memory_space<vmem>>, vector<5x1xf32>
    %5 = vector.broadcast %4 : vector<5x1xf32> to vector<5x128xf32>
    %6 = arith.addf %3, %5 : vector<5x128xf32>
    %7 = tpu.iota {dimensions = array<i32: 1>} : vector<1x128xi32>
    %c128_i32 = arith.constant 128 : i32
    %8 = arith.muli %arg1, %c128_i32 : i32
    %9 = vector.broadcast %8 : i32 to vector<1x128xi32>
    %10 = arith.addi %7, %9 : vector<1x128xi32>
    %11 = arith.sitofp %10 : vector<1x128xi32> to vector<1x128xf32>
    %cst_6 = arith.constant 8.000000e+00 : f32
    %12 = vector.broadcast %cst_6 : f32 to vector<1x128xf32>
    %13 = arith.divf %11, %12 : vector<1x128xf32>
    %14 = math.floor %13 : vector<1x128xf32>
    %cst_7 = arith.constant 8.000000e+00 : f32
    %15 = vector.broadcast %cst_7 : f32 to vector<1x128xf32>
    %16 = arith.mulf %15, %14 : vector<1x128xf32>
    %17 = arith.subf %11, %16 : vector<1x128xf32>
    %cst_8 = arith.constant 2.000000e+00 : f32
    %18 = vector.broadcast %cst_8 : f32 to vector<1x128xf32>
    %19 = arith.mulf %17, %18 : vector<1x128xf32>
    %20 = vector.extract_strided_slice %6 {offsets = [0, 0], sizes = [1, 128], strides = [1, 1]} : vector<5x128xf32> to vector<1x128xf32>
    %cst_9 = arith.constant 8.000000e+00 : f32
    %21 = vector.broadcast %cst_9 : f32 to vector<1x128xf32>
    %22 = arith.mulf %21, %20 : vector<1x128xf32>
    %23 = arith.addf %19, %22 : vector<1x128xf32>
    %c0_10 = arith.constant 0 : index
    %c0_11 = arith.constant 0 : index
    %c0_12 = arith.constant 0 : index
    %24 = vector.load %arg5[%c0_10, %c0_11, %c0_12] : memref<1x5x128xf32, #tpu.memory_space<vmem>>, vector<1x1x128xf32>
    %25 = vector.shape_cast %24 : vector<1x1x128xf32> to vector<1x128xf32>
    %26 = vector.shape_cast %23 : vector<1x128xf32> to vector<1x1x128xf32>
    tpu.vector_store %arg5[%c0_10, %c0_11, %c0_12], %26 {strides = array<i32>} : memref<1x5x128xf32, #tpu.memory_space<vmem>>, vector<1x1x128xf32>,
    %cst_13 = arith.constant 2.000000e+00 : f32
    %27 = vector.broadcast %cst_13 : f32 to vector<1x128xf32>
    %28 = arith.mulf %14, %27 : vector<1x128xf32>
    %29 = vector.extract_strided_slice %6 {offsets = [1, 0], sizes = [1, 128], strides = [1, 1]} : vector<5x128xf32> to vector<1x128xf32>
    %cst_14 = arith.constant 8.000000e+00 : f32
    %30 = vector.broadcast %cst_14 : f32 to vector<1x128xf32>
    %31 = arith.mulf %30, %29 : vector<1x128xf32>
    %32 = arith.addf %28, %31 : vector<1x128xf32>
    %c0_15 = arith.constant 0 : index
    %c1 = arith.constant 1 : index
    %c0_16 = arith.constant 0 : index
    %33 = vector.load %arg5[%c0_15, %c1, %c0_16] : memref<1x5x128xf32, #tpu.memory_space<vmem>>, vector<1x1x128xf32>
    %34 = vector.shape_cast %33 : vector<1x1x128xf32> to vector<1x128xf32>
    %35 = vector.shape_cast %32 : vector<1x128xf32> to vector<1x1x128xf32>
    tpu.vector_store %arg5[%c0_15, %c1, %c0_16], %35 {strides = array<i32>} : memref<1x5x128xf32, #tpu.memory_space<vmem>>, vector<1x1x128xf32>,
    %36 = vector.extract_strided_slice %6 {offsets = [2, 0], sizes = [2, 128], strides = [1, 1]} : vector<5x128xf32> to vector<2x128xf32>
    %37 = math.exp %36 : vector<2x128xf32>
    %cst_17 = arith.constant 8.000000e+00 : f32
    %38 = vector.broadcast %cst_17 : f32 to vector<2x128xf32>
    %39 = arith.mulf %38, %37 : vector<2x128xf32>
    %c0_18 = arith.constant 0 : index
    %c2 = arith.constant 2 : index
    %c0_19 = arith.constant 0 : index
    %40 = vector.load %arg5[%c0_18, %c2, %c0_19] : memref<1x5x128xf32, #tpu.memory_space<vmem>>, vector<1x2x128xf32>
    %41 = vector.shape_cast %40 : vector<1x2x128xf32> to vector<2x128xf32>
    %42 = vector.shape_cast %39 : vector<2x128xf32> to vector<1x2x128xf32>
    tpu.vector_store %arg5[%c0_18, %c2, %c0_19], %42 {strides = array<i32>} : memref<1x5x128xf32, #tpu.memory_space<vmem>>, vector<1x2x128xf32>,
    %43 = vector.extract_strided_slice %6 {offsets = [4, 0], sizes = [1, 128], strides = [1, 1]} : vector<5x128xf32> to vector<1x128xf32>
    %44 = math.absf %43 : vector<1x128xf32>
    %cst_20 = arith.constant 0.000000e+00 : f32
    %45 = vector.broadcast %cst_20 : f32 to vector<1x128xf32>
    %46 = arith.subf %45, %44 : vector<1x128xf32>
    %47 = math.exp %46 : vector<1x128xf32>
    %cst_21 = arith.constant 1.000000e+00 : f32
    %48 = vector.broadcast %cst_21 : f32 to vector<1x128xf32>
    %49 = arith.addf %48, %47 : vector<1x128xf32>
    %cst_22 = arith.constant 1.000000e+00 : f32
    %50 = vector.broadcast %cst_22 : f32 to vector<1x128xf32>
    %51 = arith.divf %50, %49 : vector<1x128xf32>
    %cst_23 = arith.constant 0.000000e+00 : f32
    %52 = vector.broadcast %cst_23 : f32 to vector<1x128xf32>
    %53 = arith.cmpf oge, %43, %52 : vector<1x128xf32>
    %54 = arith.mulf %47, %51 : vector<1x128xf32>
    %55 = arith.select %53, %51, %54 : vector<1x128xi1>, vector<1x128xf32>
    %c0_24 = arith.constant 0 : index
    %c4 = arith.constant 4 : index
    %c0_25 = arith.constant 0 : index
    %56 = vector.load %arg5[%c0_24, %c4, %c0_25] : memref<1x5x128xf32, #tpu.memory_space<vmem>>, vector<1x1x128xf32>
    %57 = vector.shape_cast %56 : vector<1x1x128xf32> to vector<1x128xf32>
    %58 = vector.shape_cast %55 : vector<1x128xf32> to vector<1x1x128xf32>
    tpu.vector_store %arg5[%c0_24, %c4, %c0_25], %58 {strides = array<i32>} : memref<1x5x128xf32, #tpu.memory_space<vmem>>, vector<1x1x128xf32>,
    return
  }
  func.func @transform_0(%arg0: i32, %arg1: i32) -> (i32, i32) {
    %c0_i32 = arith.constant 0 : i32
    %c0_i32_0 = arith.constant 0 : i32
    %c0_i32_1 = arith.constant 0 : i32
    return %c0_i32, %c0_i32_0 : i32, i32
  }
  func.func @transform_1(%arg0: i32, %arg1: i32) -> (i32, i32) {
    %c0_i32 = arith.constant 0 : i32
    %c0_i32_0 = arith.constant 0 : i32
    %c0_i32_1 = arith.constant 0 : i32
    return %c0_i32, %c0_i32_0 : i32, i32
  }
  func.func @transform_2(%arg0: i32, %arg1: i32) -> (i32, i32, i32) {
    %c0_i32 = arith.constant 0 : i32
    %c0_i32_0 = arith.constant 0 : i32
    return %arg0, %c0_i32, %arg1 : i32, i32, i32
  }
  func.func @transform_3(%arg0: i32, %arg1: i32) -> (i32, i32, i32) {
    %c0_i32 = arith.constant 0 : i32
    %c0_i32_0 = arith.constant 0 : i32
    return %arg0, %c0_i32, %arg1 : i32, i32, i32
  }
}

module attributes {stable_mosaic.version = 11 : i64} {
  func.func @_conv3x3_s2_kernel(%arg0: i32, %arg1: memref<3x3x32x16xbf16, #tpu.memory_space<vmem>>, %arg2: memref<32x1xf32, #tpu.memory_space<vmem>>, %arg3: memref<3x1x16x36xbf16, #tpu.memory_space<vmem>>, %arg4: memref<3x1x16x32xbf16, #tpu.memory_space<vmem>>, %arg5: memref<1x32x32xbf16, #tpu.memory_space<vmem>>) attributes {dimension_semantics = [#tpu.dimension_semantics<parallel>], iteration_bounds = array<i64: 2>, scalar_prefetch = 0 : i64, scratch_operands = 0 : i64, tpu.core_type = #tpu.core_type<tc>, window_params = [{pipeline_mode = #tpu.pipeline_mode<synchronous>, transform_indices = @transform_0, window_bounds = array<i64: 3, 3, 32, 16>}, {pipeline_mode = #tpu.pipeline_mode<synchronous>, transform_indices = @transform_1, window_bounds = array<i64: 32, 1>}, {transform_indices = @transform_2, window_bounds = array<i64: 3, 1, 16, 36>}, {transform_indices = @transform_3, window_bounds = array<i64: 3, 1, 16, 32>}, {transform_indices = @transform_4, window_bounds = array<i64: 1, 32, 32>}]} {
    %c0 = arith.constant 0 : index
    %c0_0 = arith.constant 0 : index
    %c0_1 = arith.constant 0 : index
    %c0_2 = arith.constant 0 : index
    %0 = vector.load %arg3[%c0, %c0_0, %c0_1, %c0_2] : memref<3x1x16x36xbf16, #tpu.memory_space<vmem>>, vector<1x1x16x32xbf16>
    %1 = vector.shape_cast %0 : vector<1x1x16x32xbf16> to vector<16x32xbf16>
    %c0_3 = arith.constant 0 : index
    %c0_4 = arith.constant 0 : index
    %c0_5 = arith.constant 0 : index
    %c0_6 = arith.constant 0 : index
    %2 = vector.load %arg1[%c0_3, %c0_4, %c0_5, %c0_6] : memref<3x3x32x16xbf16, #tpu.memory_space<vmem>>, vector<1x1x32x16xbf16>
    %3 = vector.shape_cast %2 : vector<1x1x32x16xbf16> to vector<32x16xbf16>
    %cst = arith.constant dense<0.000000e+00> : vector<32x32xf32>
    %4 = tpu.matmul %3, %1, %cst {dimension_numbers = #tpu.dot_dimension_numbers<[1], [0], [0], [1], [0, 0, 1, 1], [], []>} : vector<32x16xbf16>, vector<16x32xbf16>, vector<32x32xf32> -> vector<32x32xf32>
    %c1 = arith.constant 1 : index
    %c0_7 = arith.constant 0 : index
    %c0_8 = arith.constant 0 : index
    %c0_9 = arith.constant 0 : index
    %5 = vector.load %arg3[%c1, %c0_7, %c0_8, %c0_9] : memref<3x1x16x36xbf16, #tpu.memory_space<vmem>>, vector<1x1x16x32xbf16>
    %6 = vector.shape_cast %5 : vector<1x1x16x32xbf16> to vector<16x32xbf16>
    %c0_10 = arith.constant 0 : index
    %c1_11 = arith.constant 1 : index
    %c0_12 = arith.constant 0 : index
    %c0_13 = arith.constant 0 : index
    %7 = vector.load %arg1[%c0_10, %c1_11, %c0_12, %c0_13] : memref<3x3x32x16xbf16, #tpu.memory_space<vmem>>, vector<1x1x32x16xbf16>
    %8 = vector.shape_cast %7 : vector<1x1x32x16xbf16> to vector<32x16xbf16>
    %cst_14 = arith.constant dense<0.000000e+00> : vector<32x32xf32>
    %9 = tpu.matmul %8, %6, %cst_14 {dimension_numbers = #tpu.dot_dimension_numbers<[1], [0], [0], [1], [0, 0, 1, 1], [], []>} : vector<32x16xbf16>, vector<16x32xbf16>, vector<32x32xf32> -> vector<32x32xf32>
    %10 = arith.addf %4, %9 : vector<32x32xf32>
    %c2 = arith.constant 2 : index
    %c0_15 = arith.constant 0 : index
    %c0_16 = arith.constant 0 : index
    %c0_17 = arith.constant 0 : index
    %11 = vector.load %arg3[%c2, %c0_15, %c0_16, %c0_17] : memref<3x1x16x36xbf16, #tpu.memory_space<vmem>>, vector<1x1x16x32xbf16>
    %12 = vector.shape_cast %11 : vector<1x1x16x32xbf16> to vector<16x32xbf16>
    %c0_18 = arith.constant 0 : index
    %c2_19 = arith.constant 2 : index
    %c0_20 = arith.constant 0 : index
    %c0_21 = arith.constant 0 : index
    %13 = vector.load %arg1[%c0_18, %c2_19, %c0_20, %c0_21] : memref<3x3x32x16xbf16, #tpu.memory_space<vmem>>, vector<1x1x32x16xbf16>
    %14 = vector.shape_cast %13 : vector<1x1x32x16xbf16> to vector<32x16xbf16>
    %cst_22 = arith.constant dense<0.000000e+00> : vector<32x32xf32>
    %15 = tpu.matmul %14, %12, %cst_22 {dimension_numbers = #tpu.dot_dimension_numbers<[1], [0], [0], [1], [0, 0, 1, 1], [], []>} : vector<32x16xbf16>, vector<16x32xbf16>, vector<32x32xf32> -> vector<32x32xf32>
    %16 = arith.addf %10, %15 : vector<32x32xf32>
    %c0_23 = arith.constant 0 : index
    %c0_24 = arith.constant 0 : index
    %c0_25 = arith.constant 0 : index
    %c0_26 = arith.constant 0 : index
    %17 = vector.load %arg4[%c0_23, %c0_24, %c0_25, %c0_26] : memref<3x1x16x32xbf16, #tpu.memory_space<vmem>>, vector<1x1x16x32xbf16>
    %18 = vector.shape_cast %17 : vector<1x1x16x32xbf16> to vector<16x32xbf16>
    %c1_27 = arith.constant 1 : index
    %c0_28 = arith.constant 0 : index
    %c0_29 = arith.constant 0 : index
    %c0_30 = arith.constant 0 : index
    %19 = vector.load %arg1[%c1_27, %c0_28, %c0_29, %c0_30] : memref<3x3x32x16xbf16, #tpu.memory_space<vmem>>, vector<1x1x32x16xbf16>
    %20 = vector.shape_cast %19 : vector<1x1x32x16xbf16> to vector<32x16xbf16>
    %cst_31 = arith.constant dense<0.000000e+00> : vector<32x32xf32>
    %21 = tpu.matmul %20, %18, %cst_31 {dimension_numbers = #tpu.dot_dimension_numbers<[1], [0], [0], [1], [0, 0, 1, 1], [], []>} : vector<32x16xbf16>, vector<16x32xbf16>, vector<32x32xf32> -> vector<32x32xf32>
    %22 = arith.addf %16, %21 : vector<32x32xf32>
    %c1_32 = arith.constant 1 : index
    %c0_33 = arith.constant 0 : index
    %c0_34 = arith.constant 0 : index
    %c0_35 = arith.constant 0 : index
    %23 = vector.load %arg4[%c1_32, %c0_33, %c0_34, %c0_35] : memref<3x1x16x32xbf16, #tpu.memory_space<vmem>>, vector<1x1x16x32xbf16>
    %24 = vector.shape_cast %23 : vector<1x1x16x32xbf16> to vector<16x32xbf16>
    %c1_36 = arith.constant 1 : index
    %c1_37 = arith.constant 1 : index
    %c0_38 = arith.constant 0 : index
    %c0_39 = arith.constant 0 : index
    %25 = vector.load %arg1[%c1_36, %c1_37, %c0_38, %c0_39] : memref<3x3x32x16xbf16, #tpu.memory_space<vmem>>, vector<1x1x32x16xbf16>
    %26 = vector.shape_cast %25 : vector<1x1x32x16xbf16> to vector<32x16xbf16>
    %cst_40 = arith.constant dense<0.000000e+00> : vector<32x32xf32>
    %27 = tpu.matmul %26, %24, %cst_40 {dimension_numbers = #tpu.dot_dimension_numbers<[1], [0], [0], [1], [0, 0, 1, 1], [], []>} : vector<32x16xbf16>, vector<16x32xbf16>, vector<32x32xf32> -> vector<32x32xf32>
    %28 = arith.addf %22, %27 : vector<32x32xf32>
    %c2_41 = arith.constant 2 : index
    %c0_42 = arith.constant 0 : index
    %c0_43 = arith.constant 0 : index
    %c0_44 = arith.constant 0 : index
    %29 = vector.load %arg4[%c2_41, %c0_42, %c0_43, %c0_44] : memref<3x1x16x32xbf16, #tpu.memory_space<vmem>>, vector<1x1x16x32xbf16>
    %30 = vector.shape_cast %29 : vector<1x1x16x32xbf16> to vector<16x32xbf16>
    %c1_45 = arith.constant 1 : index
    %c2_46 = arith.constant 2 : index
    %c0_47 = arith.constant 0 : index
    %c0_48 = arith.constant 0 : index
    %31 = vector.load %arg1[%c1_45, %c2_46, %c0_47, %c0_48] : memref<3x3x32x16xbf16, #tpu.memory_space<vmem>>, vector<1x1x32x16xbf16>
    %32 = vector.shape_cast %31 : vector<1x1x32x16xbf16> to vector<32x16xbf16>
    %cst_49 = arith.constant dense<0.000000e+00> : vector<32x32xf32>
    %33 = tpu.matmul %32, %30, %cst_49 {dimension_numbers = #tpu.dot_dimension_numbers<[1], [0], [0], [1], [0, 0, 1, 1], [], []>} : vector<32x16xbf16>, vector<16x32xbf16>, vector<32x32xf32> -> vector<32x32xf32>
    %34 = arith.addf %28, %33 : vector<32x32xf32>
    %c0_50 = arith.constant 0 : index
    %c0_51 = arith.constant 0 : index
    %c0_52 = arith.constant 0 : index
    %c4 = arith.constant 4 : index
    %35 = vector.load %arg3[%c0_50, %c0_51, %c0_52, %c4] : memref<3x1x16x36xbf16, #tpu.memory_space<vmem>>, vector<1x1x16x32xbf16>
    %36 = vector.shape_cast %35 : vector<1x1x16x32xbf16> to vector<16x32xbf16>
    %c2_53 = arith.constant 2 : index
    %c0_54 = arith.constant 0 : index
    %c0_55 = arith.constant 0 : index
    %c0_56 = arith.constant 0 : index
    %37 = vector.load %arg1[%c2_53, %c0_54, %c0_55, %c0_56] : memref<3x3x32x16xbf16, #tpu.memory_space<vmem>>, vector<1x1x32x16xbf16>
    %38 = vector.shape_cast %37 : vector<1x1x32x16xbf16> to vector<32x16xbf16>
    %cst_57 = arith.constant dense<0.000000e+00> : vector<32x32xf32>
    %39 = tpu.matmul %38, %36, %cst_57 {dimension_numbers = #tpu.dot_dimension_numbers<[1], [0], [0], [1], [0, 0, 1, 1], [], []>} : vector<32x16xbf16>, vector<16x32xbf16>, vector<32x32xf32> -> vector<32x32xf32>
    %40 = arith.addf %34, %39 : vector<32x32xf32>
    %c1_58 = arith.constant 1 : index
    %c0_59 = arith.constant 0 : index
    %c0_60 = arith.constant 0 : index
    %c4_61 = arith.constant 4 : index
    %41 = vector.load %arg3[%c1_58, %c0_59, %c0_60, %c4_61] : memref<3x1x16x36xbf16, #tpu.memory_space<vmem>>, vector<1x1x16x32xbf16>
    %42 = vector.shape_cast %41 : vector<1x1x16x32xbf16> to vector<16x32xbf16>
    %c2_62 = arith.constant 2 : index
    %c1_63 = arith.constant 1 : index
    %c0_64 = arith.constant 0 : index
    %c0_65 = arith.constant 0 : index
    %43 = vector.load %arg1[%c2_62, %c1_63, %c0_64, %c0_65] : memref<3x3x32x16xbf16, #tpu.memory_space<vmem>>, vector<1x1x32x16xbf16>
    %44 = vector.shape_cast %43 : vector<1x1x32x16xbf16> to vector<32x16xbf16>
    %cst_66 = arith.constant dense<0.000000e+00> : vector<32x32xf32>
    %45 = tpu.matmul %44, %42, %cst_66 {dimension_numbers = #tpu.dot_dimension_numbers<[1], [0], [0], [1], [0, 0, 1, 1], [], []>} : vector<32x16xbf16>, vector<16x32xbf16>, vector<32x32xf32> -> vector<32x32xf32>
    %46 = arith.addf %40, %45 : vector<32x32xf32>
    %c2_67 = arith.constant 2 : index
    %c0_68 = arith.constant 0 : index
    %c0_69 = arith.constant 0 : index
    %c4_70 = arith.constant 4 : index
    %47 = vector.load %arg3[%c2_67, %c0_68, %c0_69, %c4_70] : memref<3x1x16x36xbf16, #tpu.memory_space<vmem>>, vector<1x1x16x32xbf16>
    %48 = vector.shape_cast %47 : vector<1x1x16x32xbf16> to vector<16x32xbf16>
    %c2_71 = arith.constant 2 : index
    %c2_72 = arith.constant 2 : index
    %c0_73 = arith.constant 0 : index
    %c0_74 = arith.constant 0 : index
    %49 = vector.load %arg1[%c2_71, %c2_72, %c0_73, %c0_74] : memref<3x3x32x16xbf16, #tpu.memory_space<vmem>>, vector<1x1x32x16xbf16>
    %50 = vector.shape_cast %49 : vector<1x1x32x16xbf16> to vector<32x16xbf16>
    %cst_75 = arith.constant dense<0.000000e+00> : vector<32x32xf32>
    %51 = tpu.matmul %50, %48, %cst_75 {dimension_numbers = #tpu.dot_dimension_numbers<[1], [0], [0], [1], [0, 0, 1, 1], [], []>} : vector<32x16xbf16>, vector<16x32xbf16>, vector<32x32xf32> -> vector<32x32xf32>
    %52 = arith.addf %46, %51 : vector<32x32xf32>
    %c0_76 = arith.constant 0 : index
    %c0_77 = arith.constant 0 : index
    %53 = vector.load %arg2[%c0_76, %c0_77] : memref<32x1xf32, #tpu.memory_space<vmem>>, vector<32x1xf32>
    %54 = vector.broadcast %53 : vector<32x1xf32> to vector<32x32xf32>
    %55 = arith.addf %52, %54 : vector<32x32xf32>
    %cst_78 = arith.constant 0.000000e+00 : f32
    %56 = vector.broadcast %cst_78 : f32 to vector<32x32xf32>
    %57 = arith.maximumf %55, %56 : vector<32x32xf32>
    %58 = arith.truncf %57 : vector<32x32xf32> to vector<32x32xbf16>
    %c0_79 = arith.constant 0 : index
    %c0_80 = arith.constant 0 : index
    %c0_81 = arith.constant 0 : index
    %59 = vector.load %arg5[%c0_79, %c0_80, %c0_81] : memref<1x32x32xbf16, #tpu.memory_space<vmem>>, vector<1x32x32xbf16>
    %60 = vector.shape_cast %59 : vector<1x32x32xbf16> to vector<32x32xbf16>
    %61 = vector.shape_cast %58 : vector<32x32xbf16> to vector<1x32x32xbf16>
    tpu.vector_store %arg5[%c0_79, %c0_80, %c0_81], %61 {strides = array<i32>} : memref<1x32x32xbf16, #tpu.memory_space<vmem>>, vector<1x32x32xbf16>,
    return
  }
  func.func @transform_0(%arg0: i32) -> (i32, i32, i32, i32) {
    %c0_i32 = arith.constant 0 : i32
    %c0_i32_0 = arith.constant 0 : i32
    %c0_i32_1 = arith.constant 0 : i32
    %c0_i32_2 = arith.constant 0 : i32
    %c0_i32_3 = arith.constant 0 : i32
    return %c0_i32, %c0_i32_0, %c0_i32_1, %c0_i32_2 : i32, i32, i32, i32
  }
  func.func @transform_1(%arg0: i32) -> (i32, i32) {
    %c0_i32 = arith.constant 0 : i32
    %c0_i32_0 = arith.constant 0 : i32
    %c0_i32_1 = arith.constant 0 : i32
    return %c0_i32, %c0_i32_0 : i32, i32
  }
  func.func @transform_2(%arg0: i32) -> (i32, i32, i32, i32) {
    %c0_i32 = arith.constant 0 : i32
    %c0_i32_0 = arith.constant 0 : i32
    %c0_i32_1 = arith.constant 0 : i32
    %c0_i32_2 = arith.constant 0 : i32
    return %c0_i32, %arg0, %c0_i32_0, %c0_i32_1 : i32, i32, i32, i32
  }
  func.func @transform_3(%arg0: i32) -> (i32, i32, i32, i32) {
    %c0_i32 = arith.constant 0 : i32
    %c0_i32_0 = arith.constant 0 : i32
    %c0_i32_1 = arith.constant 0 : i32
    %c0_i32_2 = arith.constant 0 : i32
    return %c0_i32, %arg0, %c0_i32_0, %c0_i32_1 : i32, i32, i32, i32
  }
  func.func @transform_4(%arg0: i32) -> (i32, i32, i32) {
    %c0_i32 = arith.constant 0 : i32
    %c0_i32_0 = arith.constant 0 : i32
    %c0_i32_1 = arith.constant 0 : i32
    return %arg0, %c0_i32, %c0_i32_0 : i32, i32, i32
  }
}

</mosaic_0001>

<bundles_post_ra>
// kernel: exported_mdl_forward.4
= control target key start
LH: loop header
LB: loop body
LE: loop exit
PB: predicated region body
PF: predicated region fallthrough
CT: control target
= control target key end

     0   :  { %s1220_s15 = smov 0   ;;  %s1222_s16 = smov 0   ;;  %s1373_s0 = inlined_call_operand.vmem [shape: bf16[3,3,16,3], index: 0, kind: input, shape index: {}]   ;;  %s1374_s1 = inlined_call_operand.vmem [shape: f32[16,1], index: 1, kind: input, shape index: {}]   ;;  %s1375_s2 = inlined_call_operand.vmem [shape: bf16[3,2,3,136], index: 2, kind: input, shape index: {}]   ;;  %s1376_s3 = inlined_call_operand.vmem [shape: bf16[3,2,3,128], index: 3, kind: input, shape index: {}]   ;;  %s1377_s4 = inlined_call_operand.vmem [shape: bf16[2,16,128], index: 4, kind: output, shape index: {}]  }
   0x1   :  { %s1224_s17 = smov 0  }
   0x2 LB: > { %s984_s18 = sadd.s32 4294967295, %s1188_s17   ;;  %s1237_s19 = sadd.s32 1, %s1188_s17   ;;  %s1188_s17 = sphi %s1224_s17, %s1381_s17   ;;  %s1184_s16 = sphi %s1222_s16, %s1380_s16   ;;  %s1180_s15 = sphi %s1220_s15, %s1379_s15  }
   0x3   : > { %s60_s20 = ssub.s32 %s1188_s17, %s1237_s19  ;;  %s63_s21 = sadd.s32 1, %s1184_s16 }
   0x4   : > { %p61_p0 = scmp.eq.s32.totalorder %s60_s20, 0  ;;  %p70_p1 = scmp.ne.s32.totalorder %s1184_s16, %s1180_s15 }
   0x5   : > { %p71_p2 = scmp.eq.s32.totalorder %s1188_s17, 0  ;;  %p987_p4 = scmp.ge.s32.totalorder %s1188_s17, 2 }
   0x6   : > { %s1246_s22 = scalar_select %p61_p0, %s1184_s16, %s63_s21  }
   0x7   : > { %p1248_p3 = por %p71_p2, %p70_p1  ;;  %154 = sbr.rel (%p987_p4) target bundleno = 28 (0x1c), region = 24 }
   0xe   : > { %157 = sbr.rel (!%p1248_p3) target bundleno = 21 (0x15), region = 28  ;;  %s159_s24 = sand.u32 (%p1248_p3), 1, %s1184_s16  }
   0xf   : > { %s1041_s25 = sshll.u32 (%p1248_p3), %s1188_s17, 2  ;;  %s1122_s26 = smul.u32 (%p1248_p3), 12, %s159_s24 }
  0x10   : > { %s164_s29 = scalar_lea.vmem (%p1248_p3), %s1375_s2, %s1041_s25 }
  0x11   : > { %v180_v0 = vld [vmem:[%s164_s29] sm:$0xf] (%p1248_p3)  ;;  %v182_v1 = vld [vmem:[%s164_s29 + $0x8] sm:$0xf] (%p1248_p3)  ;;  %v184_v2 = vld [vmem:[%s164_s29 + $0x10] sm:$0xf] (%p1248_p3) }
  0x12   : > { %s161_s30 = scalar_lea.vmem (%p1248_p3), [#allocation2], %s1122_s26 }
  0x13   : > { %181 = vst [vmem:[%s161_s30] sm:$0xf] (%p1248_p3), %v180_v0  ;;  %183 = vst [vmem:[%s161_s30 + $0x4] sm:$0xf] (%p1248_p3), %v182_v1 }
  0x14   : > { %185 = vst [vmem:[%s161_s30 + $0x8] sm:$0xf] (%p1248_p3), %v184_v2 }
  0x15 PF: > { %214 = sbr.rel (!%p1248_p3) target bundleno = 28 (0x1c), region = 69  ;;  %s216_s5 = sand.u32 (%p1248_p3), 1, %s1184_s16  }
  0x16   : > { %s990_s6 = sshll.u32 (%p1248_p3), %s1188_s17, 1  ;;  %s1123_s7 = smul.u32 (%p1248_p3), 6, %s216_s5 }
  0x17   : > { %s220_s10 = scalar_lea.vmem (%p1248_p3), %s1376_s3, %s990_s6 }
  0x18   : > { %v236_v3 = vld [vmem:[%s220_s10] sm:$0x3] (%p1248_p3)  ;;  %v238_v4 = vld [vmem:[%s220_s10 + $0x4] sm:$0x3] (%p1248_p3)  ;;  %v240_v5 = vld [vmem:[%s220_s10 + $0x8] sm:$0x3] (%p1248_p3) }
  0x19   : > { %s218_s11 = scalar_lea.vmem (%p1248_p3), [#allocation3], %s1123_s7 }
  0x1a   : > { %237 = vst [vmem:[%s218_s11] sm:$0x3] (%p1248_p3), %v236_v3  ;;  %239 = vst [vmem:[%s218_s11 + $0x2] sm:$0x3] (%p1248_p3), %v238_v4 }
  0x1b   : > { %241 = vst [vmem:[%s218_s11 + $0x4] sm:$0x3] (%p1248_p3), %v240_v5 }
  0x1c PF: > { %p991_p5 = scmp.ge.s32.totalorder %s1188_s17, 1  ;;  %p261_p6 = scmp.lt.s32.totalorder %s1188_s17, 3 }
  0x1e   : > { %p262_p7 = pnand %p991_p5, %p261_p6 }
  0x1f   : > { %s268_s12 = sand.u32 (!%p262_p7), 1, %s1180_s15   ;;  %vm327_vm0 = vcmask (!%p262_p7), 1040384   ;;  %vm328_vm1 = vcmask (!%p262_p7), 1041408   ;;  %v1190_v6 = vmov (!%p262_p7), 0.0   ;;  %v1191_v7 = vmov (!%p262_p7), 65535   ;;  %v1157_v12 = vld [vmem:[%s1373_s0 + $0x8] sm:$0xff] (!%p262_p7)  }
  0x20   : > { %265 = sbr.rel (%p262_p7) target bundleno = 394 (0x18a), region = 103  ;;  %1068 = vmatprep.subr.bf16.mxu0 (!%p262_p7), %v1190_v6  ;;  %v329_v8 = vsel (!%p262_p7), %vm327_vm0, 4294967295, %v1191_v7  ;;  %1074 = vmatprep.subr.bf16.mxu1 (!%p262_p7), %v1190_v6  ;;  %vm1192_vm2 = vmmov (!%p262_p7), 0   ;;  %vm323_vm3 = vcmask (!%p262_p7), 23552   ;;  %s1193_s23 = smov (!%p262_p7), 120   ;;  %v1158_v21 = vld [vmem:[%s1373_s0] sm:$0xff] (!%p262_p7)  }
  0x21   : > { %s1124_s13 = smul.u32 (!%p262_p7), 12, %s268_s12  ;;  %v1272_v9 = vsel (!%p262_p7), %vm328_vm1, %v329_v8, 0  ;;  %1070 = vmatprep.mubr.msk.bf16.mxu0 (!%p262_p7), %vm1192_vm2, %v1190_v6  ;;  %1076 = vmatprep.mubr.msk.bf16.mxu1 (!%p262_p7), %vm1192_vm2, %v1190_v6  ;;  %v1159_v28 = vld [vmem:[%s1373_s0 + $0x10] sm:$0xff] (!%p262_p7)   ;;  %v1160_v29 = vld [vmem:[%s1373_s0 + $0x18] sm:$0xff] (!%p262_p7)   ;;  %v1194_v31 = vmov (!%p262_p7), 0   ;;  %v879_v32 = vld [vmem:[%s1374_s1] sm:$0xff] (!%p262_p7) }
  0x22   : > { %s1125_s14 = smul.u32 (!%p262_p7), 6, %s268_s12  ;;  %1155 = vset.pattern.permute.xlu0 (!%p262_p7), %v1194_v31  ;;  %v880_v33 = vld [vmem:[%s1374_s1 + $0x8] sm:$0xff] (!%p262_p7)  ;;  %1156 = vset.pattern.permute.xlu1 (!%p262_p7), %v1194_v31  ;;  %v1161_v35 = vld [vmem:[%s1373_s0 + $0x20] sm:$0xff] (!%p262_p7)   ;;  %vm684_vm4 = vcmask (!%p262_p7), 982016   ;;  %v1164_v45 = vld [vmem:[%s1373_s0 + $0x38] sm:$0xff] (!%p262_p7)   ;;  %p304_p8 = scmp.lt.s32.totalorder (!%p262_p7), %s984_s18, 1 }
  0x23   : > { %s270_s15 = scalar_lea.vmem (!%p262_p7), [#allocation2], %s1124_s13  ;;  %v1162_v36 = vld [vmem:[%s1373_s0 + $0x28] sm:$0xff] (!%p262_p7)   ;;  %v1163_v46 = vld [vmem:[%s1373_s0 + $0x30] sm:$0xff] (!%p262_p7)   ;;  %v1165_v51 = vld [vmem:[%s1373_s0 + $0x40] sm:$0xff] (!%p262_p7)  }
  0x24   : > { %v1029_v10 = vld.sshfl [vmem:[%s270_s15 + $0x4] sm:$0x33 pattern:$0x76325410] (!%p262_p7)  ;;  %v310_v16 = vld [vmem:[%s270_s15] sm:$0x3] (!%p262_p7) }
  0x25   : > { %v994_v11 = vld [vmem:[%s270_s15 + $0x4] sm:$0x3] (!%p262_p7)  ;;  %753 = vrot.lane.b32.xlu1 (!%p262_p7), %v1029_v10, %s1193_s23  ;;  %v752_v13 = vcombine.high (!%p262_p7), %v1029_v10, %v1029_v10  ;;  %v1023_v14 = vld.sshfl [vmem:[%s270_s15] sm:$0x33 pattern:$0x76325410] (!%p262_p7)  ;;  %v384_v19 = vand.u32 (!%p262_p7), %v1272_v9, %v310_v16 }
  0x26   : > { %v332_v15 = vand.u32 (!%p262_p7), %v994_v11, %v1272_v9  ;;  %680 = vrot.lane.b32.xlu0 (!%p262_p7), %v1023_v14, %s1193_s23  ;;  %v679_v17 = vcombine.high (!%p262_p7), %v1023_v14, %v1023_v14  ;;  %v1035_v18 = vld.sshfl [vmem:[%s270_s15 + $0x8] sm:$0x33 pattern:$0x76325410] (!%p262_p7)  ;;  %s277_s26 = scalar_lea.vmem (!%p262_p7), [#allocation3], %s1125_s14 }
  0x27   : > { %v1001_v20 = vld [vmem:[%s270_s15 + $0x8] sm:$0x3]  ;;  %1075 = vmatpush3.bf16.msra.mxu1 %v384_v19  ;;  %v486_v23 = vld [vmem:[%s277_s26] sm:$0x3]  ;;  %v824_v24 = vcombine.high %v1035_v18, %v1035_v18  ;;  %v1010_v26 = vld [vmem:[%s277_s26 + $0x2] sm:$0x3] }
  0x28   : > { %1069 = vmatpush3.bf16.msra.mxu0 %v332_v15  ;;  %v441_v22 = vand.u32 %v1001_v20, %v1272_v9  ;;  %1086 = vmatprep.subr.bf16.mxu1 %v1190_v6  ;;  %v499_v25 = vand.u32 %v486_v23, %v1272_v9  ;;  %v1015_v27 = vld [vmem:[%s277_s26 + $0x4] sm:$0x3]  ;;  %v558_v30 = vand.u32 %v1010_v26, %v1272_v9  ;;  %s1383_s18 = smov (!%p304_p8, %s984_s18), 1 }
  0x29   : > { %1080 = vmatprep.subr.bf16.mxu0 %v1190_v6  ;;  %755 = vrot.lane.b32.xlu1 %v752_v13, %s1193_s23  ;;  %v617_v34 = vand.u32 %v1015_v27, %v1272_v9  ;;  %s1042_s24 = sshll.u32 %s1383_s18, 3 }
  0x2a   : > { %682 = vrot.lane.b32.xlu0 %v679_v17, %s1193_s23  ;;  %1077 = vmatmul.mubr.msk.bf16.vlgmr.msra.gmra.mrb[0].mxu1 %vm323_vm3, %v1158_v21  ;;  %s308_s27 = scalar_lea.vmem %s1377_s4, %s1042_s24 }
  0x2b   : > { %1071 = vmatmul.mubr.msk.bf16.vlgmr.msra.gmra.mrb[0].mxu0 %vm323_vm3, %v1157_v12  ;;  %1087 = vmatpush3.bf16.msra.mxu1 %v499_v25 }
  0x2c   : > { %1081 = vmatpush3.bf16.msra.mxu0 %v441_v22  ;;  %1082 = vmatprep.mubr.msk.bf16.mxu0 %vm1192_vm2, %v1190_v6 }
  0x2d   : > { %827 = vrot.lane.b32.xlu1 %v824_v24, %s1193_s23  ;;  %1088 = vmatprep.mubr.msk.bf16.mxu1 %vm1192_vm2, %v1190_v6 }
  0x2e   : > { %825 = vrot.lane.b32.xlu0 %v1035_v18, %s1193_s23  ;;  %1092 = vmatprep.subr.bf16.mxu0 %v1190_v6 }
  0x2f   : > { %1098 = vmatprep.subr.bf16.mxu1 %v1190_v6 }
  0x31   : > { %888 = vperm.xlu1 %1156, %v880_v33  }
  0x32   : > { %883 = vperm.xlu0 %1155, %v879_v32   ;;  %1089 = vmatmul.mubr.msk.bf16.vlgmr.msra.gmra.mrb[4].mxu1 %vm323_vm3, %v1160_v29 }
  0x33   : > { %1083 = vmatmul.mubr.msk.bf16.vlgmr.msra.gmra.mrb[4].mxu0 %vm323_vm3, %v1159_v28  ;;  %1099 = vmatpush3.bf16.msra.mxu1 %v617_v34 }
  0x34   : > { %1093 = vmatpush3.bf16.msra.mxu0 %v558_v30  ;;  %1094 = vmatprep.mubr.msk.bf16.mxu0 %vm1192_vm2, %v1190_v6 }
  0x35   : > { %1100 = vmatprep.mubr.msk.bf16.mxu1 %vm1192_vm2, %v1190_v6  ;;  %1104 = vmatprep.subr.bf16.mxu0 %v1190_v6 }
  0x36   : > { %1110 = vmatprep.subr.bf16.mxu1 %v1190_v6 }
  0x3a   : > { %1101 = vmatmul.mubr.msk.bf16.vlgmr.msra.gmra.mrb[8].mxu1 %vm323_vm3, %v1162_v36 }
  0x3b   : > { %1095 = vmatmul.mubr.msk.bf16.vlgmr.msra.gmra.mrb[8].mxu0 %vm323_vm3, %v1161_v35  ;;  %1112 = vmatprep.mubr.msk.bf16.mxu1 %vm1192_vm2, %v1190_v6 }
  0x3c   : > { %1106 = vmatprep.mubr.msk.bf16.mxu0 %vm1192_vm2, %v1190_v6 }
  0x97   : > { %v754_v37 = vpop.permute.xlu1 %753 }
  0x98   : > { %v681_v38 = vpop.permute.xlu0 %680 }
  0x9b   : > { %v756_v39 = vpop.permute.xlu1 %755 }
  0x9c   : > { %v757_v40 = vsel %vm684_vm4, %v754_v37, %v756_v39  ;;  %v683_v41 = vpop.permute.xlu0 %682 }
  0x9d   : > { %v762_v42 = vand.u32 %v757_v40, %v1272_v9  ;;  %v685_v43 = vsel %vm684_vm4, %v681_v38, %v683_v41 }
  0x9e   : > { %v690_v44 = vand.u32 %v685_v43, %v1272_v9 }
  0x9f   : > { %1111 = vmatpush3.bf16.msra.mxu1 %v762_v42  ;;  %v828_v47 = vpop.permute.xlu1 %827 }
  0xa0   : > { %1105 = vmatpush3.bf16.msra.mxu0 %v690_v44  ;;  %v826_v48 = vpop.permute.xlu0 %825 }
  0xa1   : > { %v829_v49 = vsel %vm684_vm4, %v826_v48, %v828_v47  ;;  %1116 = vmatprep.subr.bf16.mxu0 %v1190_v6 }
  0xa2   : > { %v834_v50 = vand.u32 %v829_v49, %v1272_v9  ;;  %1113 = vmatmul.mubr.msk.bf16.vlgmr.msra.gmra.mrb[12].mxu1 %vm323_vm3, %v1164_v45 }
  0xa3   : > { %1107 = vmatmul.mubr.msk.bf16.vlgmr.msra.gmra.mrb[12].mxu0 %vm323_vm3, %v1163_v46 }
  0xa4   : > { %1117 = vmatpush3.bf16.msra.mxu0 %v834_v50  ;;  %1118 = vmatprep.mubr.msk.bf16.mxu0 %vm1192_vm2, %v1190_v6 }
  0xab   : > { %1119 = vmatmul.mubr.msk.bf16.vlgmr.msra.gmra.mrb[16].mxu0 %vm323_vm3, %v1165_v51 }
  0xb0   : > { %v889_v39 = vpop.permute.xlu1 %888 }
  0xb1   : > { %v884_v35 = vpop.permute.xlu0 %883 }
  0xfd   : > { %v420_v54 = vpop.f32.mrb[0].mxu1 }
  0xfe   : > { %v368_v52 = vpop.f32.mrb[0].mxu0  ;;  %v1078_v57 = vpop.f32.mrb[1].mxu1 }
  0xff   : > { %v1072_v53 = vpop.f32.mrb[1].mxu0  ;;  %v421_v56 = vadd.f32 %v420_v54, %v368_v52  ;;  %v423_v59 = vpop.f32.mrb[2].mxu1 }
 0x100   : > { %v371_v55 = vpop.f32.mrb[2].mxu0  ;;  %v1079_v61 = vpop.f32.mrb[3].mxu1 }
 0x101   : > { %v1073_v58 = vpop.f32.mrb[3].mxu0  ;;  %v424_v60 = vadd.f32 %v423_v59, %v371_v55 }
 0x105   : > { %v535_v1 = vpop.f32.mrb[4].mxu1 }
 0x106   : > { %v477_v62 = vpop.f32.mrb[4].mxu0  ;;  %v1090_v3 = vpop.f32.mrb[5].mxu1 }
 0x107   : > { %v484_v63 = vadd.f32 %v477_v62, %v421_v56  ;;  %v1084_v0 = vpop.f32.mrb[5].mxu0  ;;  %v538_v7 = vpop.f32.mrb[6].mxu1 }
 0x108   : > { %v480_v2 = vpop.f32.mrb[6].mxu0  ;;  %v1091_v8 = vpop.f32.mrb[7].mxu1 }
 0x109   : > { %v485_v4 = vadd.f32 %v480_v2, %v424_v60  ;;  %v542_v5 = vadd.f32 %v535_v1, %v484_v63  ;;  %v1085_v6 = vpop.f32.mrb[7].mxu0 }
 0x10b   : > { %v543_v9 = vadd.f32 %v538_v7, %v485_v4 }
 0x10d   : > { %v653_v13 = vpop.f32.mrb[8].mxu1 }
 0x10e   : > { %v594_v10 = vpop.f32.mrb[8].mxu0  ;;  %v1102_v15 = vpop.f32.mrb[9].mxu1 }
 0x10f   : > { %v601_v11 = vadd.f32 %v594_v10, %v542_v5  ;;  %v1096_v12 = vpop.f32.mrb[9].mxu0  ;;  %v656_v18 = vpop.f32.mrb[10].mxu1 }
 0x110   : > { %v597_v14 = vpop.f32.mrb[10].mxu0  ;;  %v1103_v20 = vpop.f32.mrb[11].mxu1 }
 0x111   : > { %v602_v16 = vadd.f32 %v597_v14, %v543_v9  ;;  %v660_v17 = vadd.f32 %v653_v13, %v601_v11  ;;  %v1097_v19 = vpop.f32.mrb[11].mxu0 }
 0x113   : > { %v661_v21 = vadd.f32 %v656_v18, %v602_v16 }
 0x175   : > { %v798_v22 = vpop.f32.mrb[12].mxu1 }
 0x176   : > { %v726_v23 = vpop.f32.mrb[12].mxu0  ;;  %v1114_v24 = vpop.f32.mrb[13].mxu1 }
 0x177   : > { %v733_v25 = vadd.f32 %v726_v23, %v660_v17  ;;  %v1108_v26 = vpop.f32.mrb[13].mxu0  ;;  %v801_v27 = vpop.f32.mrb[14].mxu1 }
 0x178   : > { %v729_v28 = vpop.f32.mrb[14].mxu0  ;;  %v1115_v29 = vpop.f32.mrb[15].mxu1 }
 0x179   : > { %v734_v30 = vadd.f32 %v729_v28, %v661_v21  ;;  %v805_v31 = vadd.f32 %v798_v22, %v733_v25  ;;  %v1109_v32 = vpop.f32.mrb[15].mxu0 }
 0x17b   : > { %v806_v33 = vadd.f32 %v801_v27, %v734_v30 }
 0x17e   : > { %v870_v34 = vpop.f32.mrb[16].mxu0 }
 0x17f   : > { %v877_v36 = vadd.f32 %v870_v34, %v805_v31  ;;  %v1120_v37 = vpop.f32.mrb[17].mxu0 }
 0x180   : > { %v873_v38 = vpop.f32.mrb[18].mxu0 }
 0x181   : > { %v891_v40 = vadd.f32 %v884_v35, %v877_v36  ;;  %v878_v41 = vadd.f32 %v873_v38, %v806_v33  ;;  %v1121_v42 = vpop.f32.mrb[19].mxu0 }
 0x183   : > { %v892_v43 = vadd.f32 %v889_v39, %v878_v41  ;;  %v893_v44 = vmax.f32 %v891_v40, 0.0 }
 0x185   : > { %v894_v45 = vmax.f32 %v892_v43, 0.0 }
 0x187   : > { %v1048_v46 = vpack.c.bf16 %v894_v45, %v893_v44 }
 0x189   : > { %1049 = vst [vmem:[%s308_s27] sm:$0xff] %v1048_v46  }
 0x18a PF: > { %p11_p9 = scmp.ge.s32.totalorder %s1237_s19, 4   ;;  %s1379_s15 = smov %s1184_s16 }
 0x18b   : > { %s1380_s16 = smov %s1246_s22  ;;  %s1381_s17 = smov %s1237_s19 }
 0x18c   :  { %13 = sbr.rel (!%p11_p9) target bundleno = 2 (0x2), region = 166 }

// kernel: exported_mdl_forward.7
= control target key start
LH: loop header
LB: loop body
LE: loop exit
PB: predicated region body
PF: predicated region fallthrough
CT: control target
= control target key end

     0   :  { %s489_s12 = smov 0   ;;  %s491_s13 = smov 0   ;;  %s532_s0 = inlined_call_operand.vmem [shape: bf16[5,32], index: 0, kind: input, shape index: {}]   ;;  %s533_s1 = inlined_call_operand.vmem [shape: f32[5,1], index: 1, kind: input, shape index: {}]   ;;  %s534_s2 = inlined_call_operand.vmem [shape: bf16[2,32,32], index: 2, kind: input, shape index: {}]   ;;  %s535_s3 = inlined_call_operand.vmem [shape: f32[2,5,32], index: 3, kind: output, shape index: {}]  }
   0x1   :  { %s493_s14 = smov 0  }
   0x2 LB: > { %s25_s15 = sadd.s32 1, %s460_s13  ;;  %p385_p0 = scmp.ge.s32.totalorder %s464_s14, 1  ;;  %s464_s14 = sphi %s493_s14, %s13_s14   ;;  %s460_s13 = sphi %s491_s13, %s537_s13   ;;  %s456_s12 = sphi %s489_s12, %s536_s12  }
   0x3   : > { %p27_p1 = scmp.ge.s32.totalorder %s25_s15, 2  ;;  %p156_p2 = scmp.lt.s32.totalorder %s464_s14, 3 }
   0x5   : > { %s539_s15 = smov (%p27_p1, %s25_s15), 0  ;;  %p157_p3 = pnand %p385_p0, %p156_p2 }
   0x6   : > { %p185_p4 = scmp.lt.s32.totalorder (!%p157_p3), %s456_s12, 1  ;;  %v466_v0 = vmov (!%p157_p3), 0.0   ;;  %vm467_vm0 = vmmov (!%p157_p3), 0   ;;  %v206_v1 = vld [vmem:[%s533_s1] sm:$0x1f] (!%p157_p3)  ;;  %v468_v2 = vmov (!%p157_p3), 0   ;;  %v268_v6 = vlaneseq (!%p157_p3) }
   0x7   : > { %160 = sbr.rel (%p157_p3) target bundleno = 273 (0x111), region = 32  ;;  %398 = vmatprep.subr.bf16.mxu0 (!%p157_p3), %v466_v0  ;;  %402 = vmatprep.mubr.msk.bf16.mxu0 (!%p157_p3), %vm467_vm0, %v466_v0  ;;  %v201_v5 = vld [vmem:[%s532_s0] sm:$0x7] (!%p157_p3)  ;;  %vm224_vm1 = vcmask (!%p157_p3), 261120   ;;  %vm282_vm2 = vcmask (!%p157_p3), 253952   ;;  %vm285_vm3 = vcmask (!%p157_p3), 254977  }
   0x8   : > { %433 = vset.pattern.permute.xlu0 (!%p157_p3), %v468_v2  ;;  %v269_v7 = vand.u32 (!%p157_p3), 127, %v268_v6  ;;  %vm290_vm4 = vcmask (!%p157_p3), 257026   ;;  %vm302_vm5 = vcmask (!%p157_p3), 258052  }
   0x9   : > { %209 = vperm.xlu0 (!%p157_p3), %433, %v206_v1  }
   0xa   : > { %v273_v8 = vcvt.s32.f32 (!%p157_p3), %v269_v7 }
   0xc   : > { %v275_v9 = vmul.f32 (!%p157_p3), 0.25, %v273_v8 }
   0xe   : > { %s541_s12 = smov (!%p185_p4, %s456_s12), 1  ;;  %v276_v10 = vfloor.f32 %v275_v9 }
   0xf   : > { %s394_s18 = sshll.u32 %s541_s12, 4  ;;  %s388_s24 = sshll.u32 %s541_s12, 3 }
  0x10   : > { %s192_s21 = scalar_lea.vmem %s534_s2, %s394_s18  ;;  %v277_v11 = vmul.f32 4.0, %v276_v10  ;;  %s199_s27 = scalar_lea.vmem %s535_s3, %s388_s24 }
  0x11   : > { %v434_v3 = vld [vmem:[%s192_s21] sm:$0xff]   ;;  %v435_v4 = vld [vmem:[%s192_s21 + $0x8] sm:$0xff]  }
  0x12   : > { %399 = vmatpush3.bf16.msra.mxu0 %v434_v3  ;;  %v278_v12 = vsub.f32 %v273_v8, %v277_v11 }
  0x13   : > { %400 = vmatprep.subr.bf16.mxu0 %v466_v0 }
  0x14   : > { %v279_v16 = vmul.f32 4.0, %v278_v12 }
  0x16   : > { %401 = vmatpush3.bf16.msra.mxu0 %v435_v4 }
  0x19   : > { %403 = vmatmul.mubr.msk.bf16.vlgmr.msra.gmra.mrb[0].mxu0 %vm224_vm1, %v201_v5 }
  0x88   : > { %v210_v13 = vpop.permute.xlu0 %209 }
  0xec   : > { %v262_v14 = vpop.f32.mrb[0].mxu0 }
  0xed   : > { %v263_v15 = vadd.f32 %v262_v14, %v210_v13  ;;  %v404_v17 = vpop.f32.mrb[1].mxu0 }
  0xee   : > { %v265_v18 = vpop.f32.mrb[2].mxu0 }
  0xef   : > { %v280_v19 = vmul.f32 16.0, %v263_v15  ;;  %v287_v20 = vmul.f32 1.442695, %v263_v15  ;;  %v292_v21 = vand.u32 2147483647, %v263_v15  ;;  %v405_v22 = vpop.f32.mrb[3].mxu0 }
  0xf0   : > { %vm299_vm6 = vcmp.ge.f32.partialorder %v263_v15, 0.0 }
  0xf1   : > { %v281_v23 = vadd.f32 %v280_v19, %v279_v16  ;;  %v284_v24 = vadd.f32 %v280_v19, %v277_v11  ;;  %436 = vpow2.f32 %v287_v20  ;;  %v293_v25 = vsub.f32 0.0, %v292_v21 }
  0xf3   : > { %283 = vst.msk [vmem:[%s199_s27] sm:$0x1] %vm282_vm2, %v281_v23  ;;  %v294_v26 = vmul.f32 1.442695, %v293_v25 }
  0xf4   : > { %286 = vst.msk [vmem:[%s199_s27] sm:$0x2] %vm285_vm3, %v284_v24 }
  0xf5   : > { %438 = vpow2.f32 %v294_v26 }
  0xfb   : > { %v437_v27 = vpop.eup %436 }
  0xfc   : > { %v289_v28 = vmul.f32 16.0, %v437_v27 }
  0xfe   : > { %291 = vst.msk [vmem:[%s199_s27] sm:$0xc] %vm290_vm4, %v289_v28 }
  0xff   : > { %v439_v29 = vpop.eup %438 }
 0x100   : > { %v296_v30 = vadd.f32 1.0, %v439_v29 }
 0x102   : > { %440 = vrcp.f32 %v296_v30 }
 0x10c   : > { %v441_v31 = vpop.eup %440 }
 0x10d   : > { %v300_v32 = vmul.f32 %v441_v31, %v439_v29 }
 0x10f   : > { %v301_v33 = vsel %vm299_vm6, %v441_v31, %v300_v32 }
 0x110   : > { %303 = vst.msk [vmem:[%s199_s27] sm:$0x10] %vm302_vm5, %v301_v33 }
 0x111 PF: > { %s13_s14 = sadd.s32 1, %s464_s14   ;;  %s536_s12 = smov %s460_s13 }
 0x112   : > { %p10_p5 = scmp.ge.s32.totalorder %s13_s14, 4   ;;  %s537_s13 = smov %s539_s15 }
 0x114   :  { %12 = sbr.rel (!%p10_p5) target bundleno = 2 (0x2), region = 62 }

// kernel: exported_mdl_forward.6
= control target key start
LH: loop header
LB: loop body
LE: loop exit
PB: predicated region body
PF: predicated region fallthrough
CT: control target
= control target key end

     0   :  { %s473_s12 = smov 0   ;;  %s475_s13 = smov 0   ;;  %s515_s0 = inlined_call_operand.vmem [shape: bf16[5,16], index: 0, kind: input, shape index: {}]   ;;  %s516_s1 = inlined_call_operand.vmem [shape: f32[5,1], index: 1, kind: input, shape index: {}]   ;;  %s517_s2 = inlined_call_operand.vmem [shape: bf16[2,16,128], index: 2, kind: input, shape index: {}]   ;;  %s518_s3 = inlined_call_operand.vmem [shape: f32[2,5,128], index: 3, kind: output, shape index: {}]  }
   0x1   :  { %s477_s14 = smov 0  }
   0x2 LB: > { %s25_s15 = sadd.s32 1, %s444_s13  ;;  %p374_p0 = scmp.ge.s32.totalorder %s448_s14, 1  ;;  %s448_s14 = sphi %s477_s14, %s13_s14   ;;  %s444_s13 = sphi %s475_s13, %s520_s13   ;;  %s440_s12 = sphi %s473_s12, %s519_s12  }
   0x3   : > { %p27_p1 = scmp.ge.s32.totalorder %s25_s15, 2  ;;  %p156_p2 = scmp.lt.s32.totalorder %s448_s14, 3 }
   0x5   : > { %s522_s15 = smov (%p27_p1, %s25_s15), 0  ;;  %p157_p3 = pnand %p374_p0, %p156_p2 }
   0x6   : > { %p185_p4 = scmp.lt.s32.totalorder (!%p157_p3), %s440_s12, 1  ;;  %v450_v0 = vmov (!%p157_p3), 0.0   ;;  %vm451_vm0 = vmmov (!%p157_p3), 0   ;;  %v204_v1 = vld [vmem:[%s516_s1] sm:$0x1f] (!%p157_p3)  ;;  %v452_v2 = vmov (!%p157_p3), 0   ;;  %v260_v5 = vlaneseq (!%p157_p3) }
   0x7   : > { %160 = sbr.rel (%p157_p3) target bundleno = 269 (0x10d), region = 32  ;;  %385 = vmatprep.subr.bf16.mxu0 (!%p157_p3), %v450_v0  ;;  %387 = vmatprep.mubr.msk.bf16.mxu0 (!%p157_p3), %vm451_vm0, %v450_v0  ;;  %v201_v4 = vld [vmem:[%s515_s0] sm:$0x7] (!%p157_p3)  ;;  %vm216_vm1 = vcmask (!%p157_p3), 130048  }
   0x8   : > { %418 = vset.pattern.permute.xlu0 (!%p157_p3), %v452_v2  ;;  %v261_v6 = vand.u32 (!%p157_p3), 127, %v260_v5 }
   0x9   : > { %207 = vperm.xlu0 (!%p157_p3), %418, %v204_v1  }
   0xa   : > { %v265_v7 = vcvt.s32.f32 (!%p157_p3), %v261_v6 }
   0xc   : > { %v267_v8 = vmul.f32 (!%p157_p3), 0.125, %v265_v7 }
   0xe   : > { %s524_s12 = smov (!%p185_p4, %s440_s12), 1  ;;  %v268_v9 = vfloor.f32 %v267_v8 }
   0xf   : > { %s382_s18 = sshll.u32 %s524_s12, 3 }
  0x10   : > { %s192_s21 = scalar_lea.vmem %s517_s2, %s382_s18  ;;  %v269_v10 = vmul.f32 8.0, %v268_v9  ;;  %v275_v16 = vmul.f32 2.0, %v268_v9  ;;  %s199_s26 = scalar_lea.vmem %s518_s3, %s382_s18 }
  0x11   : > { %v419_v3 = vld [vmem:[%s192_s21] sm:$0xff]  }
  0x12   : > { %386 = vmatpush3.bf16.msra.mxu0 %v419_v3  ;;  %v270_v11 = vsub.f32 %v265_v7, %v269_v10 }
  0x14   : > { %v271_v15 = vmul.f32 2.0, %v270_v11 }
  0x15   : > { %388 = vmatmul.mubr.msk.bf16.vlgmr.msra.gmra.mrb[0].mxu0 %vm216_vm1, %v201_v4 }
  0x88   : > { %v208_v12 = vpop.permute.xlu0 %207 }
  0xe8   : > { %v254_v13 = vpop.f32.mrb[0].mxu0 }
  0xe9   : > { %v255_v14 = vadd.f32 %v254_v13, %v208_v12  ;;  %v389_v17 = vpop.f32.mrb[1].mxu0 }
  0xea   : > { %v257_v18 = vpop.f32.mrb[2].mxu0 }
  0xeb   : > { %v272_v19 = vmul.f32 8.0, %v255_v14  ;;  %v278_v20 = vmul.f32 1.442695, %v255_v14  ;;  %v282_v21 = vand.u32 2147483647, %v255_v14  ;;  %v390_v22 = vpop.f32.mrb[3].mxu0 }
  0xec   : > { %vm289_vm2 = vcmp.ge.f32.partialorder %v255_v14, 0.0 }
  0xed   : > { %v273_v23 = vadd.f32 %v272_v19, %v271_v15  ;;  %v276_v24 = vadd.f32 %v275_v16, %v272_v19  ;;  %420 = vpow2.f32 %v278_v20  ;;  %v283_v25 = vsub.f32 0.0, %v282_v21 }
  0xef   : > { %274 = vst [vmem:[%s199_s26] sm:$0x1] %v273_v23  ;;  %277 = vst [vmem:[%s199_s26] sm:$0x2] %v276_v24  ;;  %v284_v26 = vmul.f32 1.442695, %v283_v25 }
  0xf1   : > { %422 = vpow2.f32 %v284_v26 }
  0xf7   : > { %v421_v27 = vpop.eup %420 }
  0xf8   : > { %v280_v28 = vmul.f32 8.0, %v421_v27 }
  0xfa   : > { %281 = vst [vmem:[%s199_s26] sm:$0xc] %v280_v28 }
  0xfb   : > { %v423_v29 = vpop.eup %422 }
  0xfc   : > { %v286_v30 = vadd.f32 1.0, %v423_v29 }
  0xfe   : > { %424 = vrcp.f32 %v286_v30 }
 0x108   : > { %v425_v31 = vpop.eup %424 }
 0x109   : > { %v290_v32 = vmul.f32 %v425_v31, %v423_v29 }
 0x10b   : > { %v291_v33 = vsel %vm289_vm2, %v425_v31, %v290_v32 }
 0x10c   : > { %292 = vst [vmem:[%s199_s26] sm:$0x10] %v291_v33 }
 0x10d PF: > { %s13_s14 = sadd.s32 1, %s448_s14   ;;  %s519_s12 = smov %s444_s13 }
 0x10e   : > { %p10_p5 = scmp.ge.s32.totalorder %s13_s14, 4   ;;  %s520_s13 = smov %s522_s15 }
 0x110   :  { %12 = sbr.rel (!%p10_p5) target bundleno = 2 (0x2), region = 62 }

// kernel: exported_mdl_forward.5
= control target key start
LH: loop header
LB: loop body
LE: loop exit
PB: predicated region body
PF: predicated region fallthrough
CT: control target
= control target key end

     0   :  { %s1519_s15 = smov 0   ;;  %s1521_s16 = smov 0   ;;  %s1670_s0 = inlined_call_operand.vmem [shape: bf16[3,3,32,16], index: 0, kind: input, shape index: {}]   ;;  %s1671_s1 = inlined_call_operand.vmem [shape: f32[32,1], index: 1, kind: input, shape index: {}]   ;;  %s1672_s2 = inlined_call_operand.vmem [shape: bf16[3,2,16,36], index: 2, kind: input, shape index: {}]   ;;  %s1673_s3 = inlined_call_operand.vmem [shape: bf16[3,2,16,32], index: 3, kind: input, shape index: {}]   ;;  %s1674_s4 = inlined_call_operand.vmem [shape: bf16[2,32,32], index: 4, kind: output, shape index: {}]  }
   0x1   :  { %s1523_s17 = smov 0  }
   0x2 LB: > { %s1194_s18 = sadd.s32 4294967295, %s1490_s17   ;;  %s1536_s19 = sadd.s32 1, %s1490_s17   ;;  %s1490_s17 = sphi %s1523_s17, %s1678_s17   ;;  %s1486_s16 = sphi %s1521_s16, %s1677_s16   ;;  %s1482_s15 = sphi %s1519_s15, %s1676_s15  }
   0x3   : > { %s60_s20 = ssub.s32 %s1490_s17, %s1536_s19  ;;  %s63_s21 = sadd.s32 1, %s1486_s16 }
   0x4   : > { %p61_p0 = scmp.eq.s32.totalorder %s60_s20, 0  ;;  %p70_p1 = scmp.ne.s32.totalorder %s1486_s16, %s1482_s15 }
   0x5   : > { %p71_p2 = scmp.eq.s32.totalorder %s1490_s17, 0  ;;  %p1197_p4 = scmp.ge.s32.totalorder %s1490_s17, 2 }
   0x6   : > { %s1545_s22 = scalar_select %p61_p0, %s1486_s16, %s63_s21  }
   0x7   : > { %p1547_p3 = por %p71_p2, %p70_p1  ;;  %154 = sbr.rel (%p1197_p4) target bundleno = 28 (0x1c), region = 24 }
   0xe   : > { %157 = sbr.rel (!%p1547_p3) target bundleno = 21 (0x15), region = 28  ;;  %s159_s24 = sand.u32 (%p1547_p3), 1, %s1486_s16  }
   0xf   : > { %s1293_s25 = sshll.u32 (%p1547_p3), %s1490_s17, 3  ;;  %s1413_s26 = smul.u32 (%p1547_p3), 24, %s159_s24 }
  0x10   : > { %s164_s29 = scalar_lea.vmem (%p1547_p3), %s1672_s2, %s1293_s25 }
  0x11   : > { %v180_v0 = vld [vmem:[%s164_s29] sm:$0xff] (%p1547_p3)   ;;  %v184_v1 = vld [vmem:[%s164_s29 + $0x10] sm:$0xff] (%p1547_p3)   ;;  %s161_s30 = scalar_lea.vmem (%p1547_p3), [#allocation2], %s1413_s26 }
  0x12   : > { %v188_v2 = vld [vmem:[%s164_s29 + $0x20] sm:$0xff] (%p1547_p3)   ;;  %181 = vst [vmem:[%s161_s30] sm:$0xff] (%p1547_p3), %v180_v0   ;;  %185 = vst [vmem:[%s161_s30 + $0x8] sm:$0xff] (%p1547_p3), %v184_v1  }
  0x13   : > { %189 = vst [vmem:[%s161_s30 + $0x10] sm:$0xff] (%p1547_p3), %v188_v2  }
  0x15 PF: > { %226 = sbr.rel (!%p1547_p3) target bundleno = 28 (0x1c), region = 69  ;;  %s228_s5 = sand.u32 (%p1547_p3), 1, %s1486_s16  }
  0x16   : > { %s1294_s6 = sshll.u32 (%p1547_p3), %s1490_s17, 3  ;;  %s1414_s7 = smul.u32 (%p1547_p3), 24, %s228_s5 }
  0x17   : > { %s233_s10 = scalar_lea.vmem (%p1547_p3), %s1673_s3, %s1294_s6 }
  0x18   : > { %v249_v3 = vld [vmem:[%s233_s10] sm:$0xff] (%p1547_p3)   ;;  %v253_v4 = vld [vmem:[%s233_s10 + $0x10] sm:$0xff] (%p1547_p3)   ;;  %s230_s11 = scalar_lea.vmem (%p1547_p3), [#allocation3], %s1414_s7 }
  0x19   : > { %v257_v5 = vld [vmem:[%s233_s10 + $0x20] sm:$0xff] (%p1547_p3)   ;;  %250 = vst [vmem:[%s230_s11] sm:$0xff] (%p1547_p3), %v249_v3   ;;  %254 = vst [vmem:[%s230_s11 + $0x8] sm:$0xff] (%p1547_p3), %v253_v4  }
  0x1a   : > { %258 = vst [vmem:[%s230_s11 + $0x10] sm:$0xff] (%p1547_p3), %v257_v5  }
  0x1c PF: > { %p1202_p5 = scmp.ge.s32.totalorder %s1490_s17, 1  ;;  %p294_p6 = scmp.lt.s32.totalorder %s1490_s17, 3 }
  0x1e   : > { %p295_p7 = pnand %p1202_p5, %p294_p6 }
  0x1f   : > { %s301_s12 = sand.u32 (!%p295_p7), 1, %s1482_s15   ;;  %v1447_v6 = vld [vmem:[%s1670_s0 + $0x10] sm:$0xff] (!%p295_p7)   ;;  %vm373_vm0 = vcmask (!%p295_p7), 130048   ;;  %v1448_v9 = vld [vmem:[%s1670_s0 + $0x18] sm:$0xff] (!%p295_p7)   ;;  %s1492_s25 = smov (!%p295_p7), 124   ;;  %v1449_v11 = vld [vmem:[%s1670_s0] sm:$0xff] (!%p295_p7)  }
  0x20   : > { %298 = sbr.rel (%p295_p7) target bundleno = 404 (0x194), region = 110  ;;  %1329 = vmatprep.mubr.msk.bf16.mxu1 (!%p295_p7), %vm373_vm0, %v1447_v6  ;;  %v1452_v13 = vld [vmem:[%s1670_s0 + $0x40] sm:$0xff] (!%p295_p7)   ;;  %v1453_v14 = vld [vmem:[%s1670_s0 + $0x48] sm:$0xff] (!%p295_p7)   ;;  %v1457_v16 = vld [vmem:[%s1670_s0 + $0x50] sm:$0xff] (!%p295_p7)   ;;  %v1493_v21 = vmov (!%p295_p7), 0   ;;  %p337_p8 = scmp.lt.s32.totalorder (!%p295_p7), %s1194_s18, 1 }
  0x21   : > { %s1415_s13 = smul.u32 (!%p295_p7), 24, %s301_s12  ;;  %1353 = vmatprep.mubr.msk.bf16.mxu0 (!%p295_p7), %vm373_vm0, %v1452_v13  ;;  %v1450_v17 = vld [vmem:[%s1670_s0 + $0x8] sm:$0xff] (!%p295_p7)   ;;  %v1454_v18 = vld [vmem:[%s1670_s0 + $0x20] sm:$0xff] (!%p295_p7)   ;;  %v1458_v20 = vld [vmem:[%s1670_s0 + $0x58] sm:$0xff] (!%p295_p7)   ;;  %1442 = vset.pattern.permute.xlu1 (!%p295_p7), %v1493_v21  ;;  %vm1110_vm1 = vcmask (!%p295_p7), 257024  }
  0x22   : > { %1443 = vset.pattern.permute.xlu0 (!%p295_p7), %v1493_v21  ;;  %v1462_v22 = vld [vmem:[%s1670_s0 + $0x60] sm:$0xff] (!%p295_p7)   ;;  %v1063_v24 = vld [vmem:[%s1671_s1 + $0x8] sm:$0xff] (!%p295_p7)  ;;  %v1064_v25 = vld [vmem:[%s1671_s1 + $0x10] sm:$0xff] (!%p295_p7) }
  0x23   : > { %s303_s21 = scalar_lea.vmem (!%p295_p7), [#allocation2], %s1415_s13  ;;  %s310_s27 = scalar_lea.vmem (!%p295_p7), [#allocation3], %s1415_s13  ;;  %v1062_v23 = vld [vmem:[%s1671_s1] sm:$0xff] (!%p295_p7)  ;;  %v1065_v26 = vld [vmem:[%s1671_s1 + $0x18] sm:$0xff] (!%p295_p7)  ;;  %v1455_v27 = vld [vmem:[%s1670_s0 + $0x28] sm:$0xff] (!%p295_p7)  }
  0x24   : > { %v1444_v7 = vld [vmem:[%s303_s21] sm:$0xff] (!%p295_p7)   ;;  %v1445_v8 = vld [vmem:[%s303_s21 + $0x8] sm:$0xff] (!%p295_p7)   ;;  %v1446_v10 = vld [vmem:[%s303_s21 + $0x10] sm:$0xff] (!%p295_p7)  }
  0x25   : > { %846 = vrot.lane.b32.xlu0 (!%p295_p7), %v1444_v7, %s1492_s25  ;;  %1327 = vmatprep.subr.bf16.mxu1 (!%p295_p7), %v1445_v8  ;;  %v1451_v12 = vld [vmem:[%s310_s27 + $0x8] sm:$0xff] (!%p295_p7)   ;;  %v1456_v15 = vld [vmem:[%s310_s27 + $0x10] sm:$0xff] (!%p295_p7)   ;;  %v1459_v19 = vld [vmem:[%s310_s27] sm:$0xff] (!%p295_p7)  }
  0x26   : > { %1000 = vrot.lane.b32.xlu1 (!%p295_p7), %v1446_v10, %s1492_s25  ;;  %1328 = vmatpush3.bf16.msra.mxu1 (!%p295_p7), %v1445_v8  ;;  %v1460_v28 = vld [vmem:[%s1670_s0 + $0x30] sm:$0xff] (!%p295_p7)   ;;  %v1461_v29 = vld [vmem:[%s1670_s0 + $0x38] sm:$0xff] (!%p295_p7)   ;;  %v1463_v31 = vld [vmem:[%s1670_s0 + $0x68] sm:$0xff] (!%p295_p7)  }
  0x27   : > { %1333 = vmatprep.subr.bf16.mxu1 %v1444_v7  ;;  %1351 = vmatprep.subr.bf16.mxu0 %v1451_v12  ;;  %v1464_v32 = vld [vmem:[%s1670_s0 + $0x70] sm:$0xff]   ;;  %v1465_v35 = vld [vmem:[%s1670_s0 + $0x78] sm:$0xff]   ;;  %v1466_v36 = vld [vmem:[%s1670_s0 + $0x80] sm:$0xff]   ;;  %s1680_s18 = smov (!%p337_p8, %s1194_s18), 1 }
  0x28   : > { %1352 = vmatpush3.bf16.msra.mxu0 %v1451_v12  ;;  %v1467_v37 = vld [vmem:[%s1670_s0 + $0x88] sm:$0xff]  }
  0x29   : > { %923 = vrot.lane.b32.xlu0 %v1445_v8, %s1492_s25  ;;  %1330 = vmatmul.mubr.msk.bf16.vlgmr.msra.gmra.mrb[0].mxu1 %vm373_vm0, %v1448_v9  ;;  %s1295_s25 = sshll.u32 %s1680_s18, 4 }
  0x2a   : > { %1334 = vmatpush3.bf16.msra.mxu1 %v1444_v7  ;;  %1335 = vmatprep.mubr.msk.bf16.mxu1 %vm373_vm0, %v1449_v11  ;;  %s341_s17 = scalar_lea.vmem %s1674_s4, %s1295_s25 }
  0x2b   : > { %1339 = vmatprep.subr.bf16.mxu1 %v1446_v10  ;;  %1354 = vmatmul.mubr.msk.bf16.vlgmr.msra.gmra.mrb[0].mxu0 %vm373_vm0, %v1453_v14 }
  0x2c   : > { %1357 = vmatprep.subr.bf16.mxu0 %v1456_v15  ;;  %1359 = vmatprep.mubr.msk.bf16.mxu0 %vm373_vm0, %v1457_v16 }
  0x2d   : > { %1358 = vmatpush3.bf16.msra.mxu0 %v1456_v15  ;;  %1068 = vperm.xlu1 %1442, %v1062_v23  }
  0x2e   : > { %1073 = vperm.xlu0 %1443, %v1063_v24  }
  0x31   : > { %1078 = vperm.xlu1 %1442, %v1064_v25  }
  0x35   : > { %1336 = vmatmul.mubr.msk.bf16.vlgmr.msra.gmra.mrb[0].mxu1 %vm373_vm0, %v1450_v17  ;;  %1083 = vperm.xlu1 %1442, %v1065_v26  }
  0x36   : > { %1340 = vmatpush3.bf16.msra.mxu1 %v1446_v10  ;;  %1341 = vmatprep.mubr.msk.bf16.mxu1 %vm373_vm0, %v1454_v18 }
  0x37   : > { %1345 = vmatprep.subr.bf16.mxu1 %v1459_v19  ;;  %1360 = vmatmul.mubr.msk.bf16.vlgmr.msra.gmra.mrb[0].mxu0 %vm373_vm0, %v1458_v20 }
  0x38   : > { %1365 = vmatprep.mubr.msk.bf16.mxu0 %vm373_vm0, %v1462_v22 }
  0x41   : > { %1342 = vmatmul.mubr.msk.bf16.vlgmr.msra.gmra.mrb[0].mxu1 %vm373_vm0, %v1455_v27 }
  0x42   : > { %1346 = vmatpush3.bf16.msra.mxu1 %v1459_v19  ;;  %1347 = vmatprep.mubr.msk.bf16.mxu1 %vm373_vm0, %v1460_v28 }
  0x4d   : > { %1348 = vmatmul.mubr.msk.bf16.vlgmr.msra.gmra.mrb[0].mxu1 %vm373_vm0, %v1461_v29 }
  0x97   : > { %v847_v30 = vpop.permute.xlu0 %846 }
  0x98   : > { %1363 = vmatprep.subr.bf16.mxu0 %v847_v30  ;;  %v1001_v34 = vpop.permute.xlu1 %1000 }
  0x99   : > { %1364 = vmatpush3.bf16.msra.mxu0 %v847_v30 }
  0x9b   : > { %v924_v33 = vpop.permute.xlu0 %923 }
  0x9c   : > { %1366 = vmatmul.mubr.msk.bf16.vlgmr.msra.gmra.mrb[0].mxu0 %vm373_vm0, %v1463_v31  ;;  %1369 = vmatprep.subr.bf16.mxu0 %v924_v33 }
  0x9d   : > { %1370 = vmatpush3.bf16.msra.mxu0 %v924_v33  ;;  %1371 = vmatprep.mubr.msk.bf16.mxu0 %vm373_vm0, %v1464_v32 }
  0x9e   : > { %1375 = vmatprep.subr.bf16.mxu0 %v1001_v34 }
  0xa8   : > { %1372 = vmatmul.mubr.msk.bf16.vlgmr.msra.gmra.mrb[0].mxu0 %vm373_vm0, %v1465_v35 }
  0xa9   : > { %1376 = vmatpush3.bf16.msra.mxu0 %v1001_v34  ;;  %1377 = vmatprep.mubr.msk.bf16.mxu0 %vm373_vm0, %v1466_v36 }
  0xac   : > { %v1069_v42 = vpop.permute.xlu1 %1068 }
  0xad   : > { %v1074_v52 = vpop.permute.xlu0 %1073 }
  0xb0   : > { %v1079_v43 = vpop.permute.xlu1 %1078 }
  0xb4   : > { %1378 = vmatmul.mubr.msk.bf16.vlgmr.msra.gmra.mrb[0].mxu0 %vm373_vm0, %v1467_v37  ;;  %v1084_v55 = vpop.permute.xlu1 %1083 }
 0x120   : > { %v1349_v38 = vpop.f32.mrb[0].mxu1 }
 0x121   : > { %v646_v39 = vpop.f32.mrb[1].mxu1 }
 0x122   : > { %v1350_v40 = vpop.f32.mrb[2].mxu1 }
 0x123   : > { %v649_v41 = vpop.f32.mrb[3].mxu1 }
 0x187   : > { %v1379_v44 = vpop.f32.mrb[0].mxu0 }
 0x188   : > { %v1381_v45 = vadd.f32 %v1379_v44, %v1349_v38  ;;  %v1043_v46 = vpop.f32.mrb[1].mxu0 }
 0x189   : > { %v1382_v47 = vadd.f32 %v1043_v46, %v646_v39  ;;  %v1380_v48 = vpop.f32.mrb[2].mxu0 }
 0x18a   : > { %v1088_v49 = vadd.f32 %v1381_v45, %v1079_v43  ;;  %v1383_v50 = vadd.f32 %v1380_v48, %v1350_v40  ;;  %v1046_v51 = vpop.f32.mrb[3].mxu0 }
 0x18b   : > { %v1086_v53 = vadd.f32 %v1382_v47, %v1069_v42  ;;  %v1384_v54 = vadd.f32 %v1046_v51, %v649_v41 }
 0x18c   : > { %v1092_v56 = vmax.f32 %v1088_v49, 0.0  ;;  %v1089_v57 = vadd.f32 %v1383_v50, %v1084_v55 }
 0x18d   : > { %v1090_v58 = vmax.f32 %v1086_v53, 0.0  ;;  %v1087_v59 = vadd.f32 %v1384_v54, %v1074_v52 }
 0x18e   : > { %v1298_v60 = vpack.c.bf16 %v1092_v56, %v1092_v56  ;;  %v1093_v61 = vmax.f32 %v1089_v57, 0.0 }
 0x18f   : > { %v1296_v62 = vpack.c.bf16 %v1090_v58, %v1090_v58  ;;  %v1091_v63 = vmax.f32 %v1087_v59, 0.0 }
 0x190   : > { %1113 = vst.msk [vmem:[%s341_s17 + $0x8] sm:$0xf] %vm1110_vm1, %v1298_v60  ;;  %v1299_v0 = vpack.c.bf16 %v1093_v61, %v1093_v61 }
 0x191   : > { %1111 = vst.msk [vmem:[%s341_s17] sm:$0xf] %vm1110_vm1, %v1296_v62  ;;  %v1297_v1 = vpack.c.bf16 %v1091_v63, %v1091_v63 }
 0x192   : > { %1114 = vst.msk [vmem:[%s341_s17 + $0xc] sm:$0xf] %vm1110_vm1, %v1299_v0 }
 0x193   : > { %1112 = vst.msk [vmem:[%s341_s17 + $0x4] sm:$0xf] %vm1110_vm1, %v1297_v1 }
 0x194 PF: > { %p11_p9 = scmp.ge.s32.totalorder %s1536_s19, 4   ;;  %s1676_s15 = smov %s1486_s16 }
 0x195   : > { %s1677_s16 = smov %s1545_s22  ;;  %s1678_s17 = smov %s1536_s19 }
 0x196   :  { %13 = sbr.rel (!%p11_p9) target bundleno = 2 (0x2), region = 173 }

</bundles_post_ra>
